<compile_context>
chip_gen: v7x
topology: tpu7x:2x2x1
jax: 0.10.0
libtpu: 0.0.40
codegen_flags: <defaults>
</compile_context>

<pallas_src>
import math

import jax
import jax.numpy as jnp
from jax.experimental import pallas as pl
from jax.experimental.pallas import tpu as pltpu


def _mlp_kernel(x_ref, w1_ref, b1_ref, w2_ref, b2_ref, wl_ref, bl_ref, y_ref):
    """Fused MLP forward for one batch tile.

    x_ref : (tm, D_pad)    bf16 flattened input tile
    w1_ref: (D_pad, H_pad) bf16 fc1 weight (pre-transposed, pre-padded)
    b1_ref: (1, H_pad)     f32
    w2_ref: (H_pad, H_pad) bf16
    b2_ref: (1, H_pad)     f32
    wl_ref: (H_pad, N_pad) bf16 head weight
    bl_ref: (1, N_pad)     f32
    y_ref : (tm, N_pad)    f32 (lane-dense, padded output)
    """
    x = x_ref[...]

    # act1 = relu(fc1(x));  dropout(0.5) -> identity (eval mode)
    a1 = jnp.dot(x, w1_ref[...], preferred_element_type=jnp.float32) + b1_ref[...]
    a1 = jnp.maximum(a1, 0.0).astype(jnp.bfloat16)

    # act2 = relu(fc2(act1));  dropout(0.5) -> identity (eval mode)
    a2 = jnp.dot(a1, w2_ref[...], preferred_element_type=jnp.float32) + b2_ref[...]
    a2 = jnp.maximum(a2, 0.0).astype(jnp.bfloat16)

    # y = last[t](act2)
    y = jnp.dot(a2, wl_ref[...], preferred_element_type=jnp.float32) + bl_ref[...]
    y_ref[...] = y.astype(y_ref.dtype)


def _round_up(n, m):
    return ((n + m - 1) // m) * m


def init_params(key, inputsize, taskcla, mul=1):
    """PyTorch-Linear-style init: U(-1/sqrt(fan_in), +1/sqrt(fan_in)), PyTorch layout."""
    ncha, size, _ = inputsize
    d_in = ncha * size * size
    unitN = 400
    hidden = int(unitN * mul)

    def linear_init(k, out_f, in_f):
        kw, kb = jax.random.split(k)
        bound = 1.0 / math.sqrt(in_f)
        w = jax.random.uniform(kw, (out_f, in_f), jnp.float32, -bound, bound)
        b = jax.random.uniform(kb, (out_f,), jnp.float32, -bound, bound)
        return w, b

    keys = jax.random.split(key, 2 + len(taskcla))
    fc1_w, fc1_b = linear_init(keys[0], hidden, d_in)
    fc2_w, fc2_b = linear_init(keys[1], hidden, hidden)

    last_w, last_b = [], []
    for i, (_, n) in enumerate(taskcla):
        w, b = linear_init(keys[2 + i], n, hidden)
        last_w.append(w)
        last_b.append(b)

    return {
        "fc1_w": fc1_w, "fc1_b": fc1_b,
        "fc2_w": fc2_w, "fc2_b": fc2_b,
        "last_w": last_w, "last_b": last_b,
    }


def prepare_params(params, taskcla):
    """One-time transpose + 128-pad + bf16 cast of all weights (no per-call work)."""
    fc1_w = params["fc1_w"]                    # (H, D_in) PyTorch layout
    H, D_in = fc1_w.shape
    H_pad = _round_up(H, 128)
    D_pad = _round_up(D_in, 128)
    n_max = max(n for _, n in taskcla)
    N_pad = _round_up(n_max, 128)

    w1 = jnp.zeros((D_pad, H_pad), jnp.bfloat16)
    w1 = w1.at[:D_in, :H].set(fc1_w.T.astype(jnp.bfloat16))
    b1 = jnp.zeros((1, H_pad), jnp.float32).at[0, :H].set(params["fc1_b"])

    w2 = jnp.zeros((H_pad, H_pad), jnp.bfloat16)
    w2 = w2.at[:H, :H].set(params["fc2_w"].T.astype(jnp.bfloat16))
    b2 = jnp.zeros((1, H_pad), jnp.float32).at[0, :H].set(params["fc2_b"])

    T = len(taskcla)
    wl = jnp.zeros((T, H_pad, N_pad), jnp.bfloat16)
    bl = jnp.zeros((T, 1, N_pad), jnp.float32)
    for i, (_, n) in enumerate(taskcla):
        wl = wl.at[i, :H, :n].set(params["last_w"][i].T.astype(jnp.bfloat16))
        bl = bl.at[i, 0, :n].set(params["last_b"][i])

    return {
        "w1": w1, "b1": b1, "w2": w2, "b2": b2,
        "wl": wl, "bl": bl,
        "D_in": D_in, "D_pad": D_pad, "H_pad": H_pad, "N_pad": N_pad,
        "n_out": [n for _, n in taskcla],
    }


def mlp_forward(t, x, prep):
    """Fused Pallas MLP forward for static task index `t`.

    x: (B, ncha, size, size) float32, NCHW like the PyTorch module.
    prep: output of prepare_params().
    """
    B = x.shape[0]
    D_in, D_pad = prep["D_in"], prep["D_pad"]
    H_pad, N_pad = prep["H_pad"], prep["N_pad"]
    n_out = prep["n_out"][t]

    x2d = x.reshape(B, -1).astype(jnp.bfloat16)        # == x.view(B, -1)
    if D_pad != D_in:
        x2d = jnp.pad(x2d, ((0, 0), (0, D_pad - D_in)))

    # Batch tiling: whole-batch single block for small B; 256-row tiles
    # (padded) for large B so x/y DMA pipelines against MXU compute.
    TM = 256
    if B > TM:
        tm = TM
        B_pad = pl.cdiv(B, TM) * TM
        if B_pad != B:
            x2d = jnp.pad(x2d, ((0, B_pad - B), (0, 0)))
    else:
        tm = B
        B_pad = B

    wl = prep["wl"][t]          # (H_pad, N_pad), static t
    bl = prep["bl"][t]          # (1, N_pad)

    flops = 2 * B_pad * (D_pad * H_pad + H_pad * H_pad + H_pad * N_pad)
    bytes_accessed = (
        x2d.size * 2
        + prep["w1"].size * 2 + prep["w2"].size * 2 + wl.size * 2
        + (prep["b1"].size + prep["b2"].size + bl.size) * 4
        + B_pad * N_pad * 4
    )

    y = pl.pallas_call(
        _mlp_kernel,
        out_shape=jax.ShapeDtypeStruct((B_pad, N_pad), jnp.float32),
        grid_spec=pltpu.PrefetchScalarGridSpec(
            num_scalar_prefetch=0,
            grid=(B_pad // tm,),
            in_specs=[
                pl.BlockSpec((tm, D_pad), lambda i: (i, 0)),     # x tile
                pl.BlockSpec((D_pad, H_pad), lambda i: (0, 0)),  # w1 (resident)
                pl.BlockSpec((1, H_pad), lambda i: (0, 0)),      # b1
                pl.BlockSpec((H_pad, H_pad), lambda i: (0, 0)),  # w2 (resident)
                pl.BlockSpec((1, H_pad), lambda i: (0, 0)),      # b2
                pl.BlockSpec((H_pad, N_pad), lambda i: (0, 0)),  # head w (resident)
                pl.BlockSpec((1, N_pad), lambda i: (0, 0)),      # head b
            ],
            out_specs=pl.BlockSpec((tm, N_pad), lambda i: (i, 0)),
        ),
        compiler_params=pltpu.CompilerParams(
            dimension_semantics=("parallel",),   # shards batch tiles across TCs on v7x
        ),
        cost_estimate=pl.CostEstimate(
            flops=flops, transcendentals=0, bytes_accessed=bytes_accessed),
    )(x2d, prep["w1"], prep["b1"], prep["w2"], prep["b2"], wl, bl)

    return y[:B, :n_out]


if __name__ == "__main__":
    key = jax.random.PRNGKey(0)
    k_param, k_x = jax.random.split(key)

    # Small shapes consistent with the module's (ncha, size, size) input spec.
    inputsize = (4, 16, 16)          # ncha=4, size=16 -> flattened 1024 features
    taskcla = [(0, 10), (1, 5)]      # two task heads
    mul = 1                          # hidden = 400 (padded to 512 internally)

    params = init_params(k_param, inputsize, taskcla, mul=mul)
    prep = prepare_params(params, taskcla)

    B = 2
    x = jax.random.normal(k_x, (B,) + inputsize, dtype=jnp.float32)

    # Reference with the same bf16 input/weight rounding, f32 accumulation.
    def ref(t, xv, p):
        def bf(v):
            return v.astype(jnp.bfloat16).astype(jnp.float32)
        h = bf(xv.reshape(xv.shape[0], -1))
        a1 = jnp.maximum(h @ bf(p["fc1_w"]).T + p["fc1_b"], 0.0)
        a2 = jnp.maximum(bf(a1) @ bf(p["fc2_w"]).T + p["fc2_b"], 0.0)
        return bf(a2) @ bf(p["last_w"][t]).T + p["last_b"][t]

    ok = True
    for t in (0, 1):
        y = mlp_forward(t, x, prep)
        jax.block_until_ready(y)
        y_ref = ref(t, x, params)
        ok &= y.shape == (B, taskcla[t][1])
        ok &= bool(jnp.allclose(y, y_ref, atol=2e-3, rtol=2e-3))

    assert ok
    print("KERNEL_OK")
</pallas_src>

<mosaic_0001>
module attributes {stable_mosaic.version = 11 : i64} {
  func.func @_mlp_kernel(%arg0: i32, %arg1: memref<2x1024xbf16, #tpu.memory_space<vmem>>, %arg2: memref<1024x512xbf16, #tpu.memory_space<vmem>>, %arg3: memref<1x512xf32, #tpu.memory_space<vmem>>, %arg4: memref<512x512xbf16, #tpu.memory_space<vmem>>, %arg5: memref<1x512xf32, #tpu.memory_space<vmem>>, %arg6: memref<512x128xbf16, #tpu.memory_space<vmem>>, %arg7: memref<1x128xf32, #tpu.memory_space<vmem>>, %arg8: memref<2x128xf32, #tpu.memory_space<vmem>>) attributes {dimension_semantics = [#tpu.dimension_semantics<parallel>], iteration_bounds = array<i64: 1>, scalar_prefetch = 0 : i64, scratch_operands = 0 : i64, tpu.core_type = #tpu.core_type<tc>, window_params = [{transform_indices = @transform_0, window_bounds = array<i64: 2, 1024>}, {pipeline_mode = #tpu.pipeline_mode<synchronous>, transform_indices = @transform_1, window_bounds = array<i64: 1024, 512>}, {pipeline_mode = #tpu.pipeline_mode<synchronous>, transform_indices = @transform_2, window_bounds = array<i64: 1, 512>}, {pipeline_mode = #tpu.pipeline_mode<synchronous>, transform_indices = @transform_3, window_bounds = array<i64: 512, 512>}, {pipeline_mode = #tpu.pipeline_mode<synchronous>, transform_indices = @transform_4, window_bounds = array<i64: 1, 512>}, {pipeline_mode = #tpu.pipeline_mode<synchronous>, transform_indices = @transform_5, window_bounds = array<i64: 512, 128>}, {pipeline_mode = #tpu.pipeline_mode<synchronous>, transform_indices = @transform_6, window_bounds = array<i64: 1, 128>}, {transform_indices = @transform_7, window_bounds = array<i64: 2, 128>}]} {
    %c0 = arith.constant 0 : index
    %c0_0 = arith.constant 0 : index
    %0 = vector.load %arg1[%c0, %c0_0] : memref<2x1024xbf16, #tpu.memory_space<vmem>>, vector<2x1024xbf16>
    %c0_1 = arith.constant 0 : index
    %c0_2 = arith.constant 0 : index
    %1 = vector.load %arg2[%c0_1, %c0_2] : memref<1024x512xbf16, #tpu.memory_space<vmem>>, vector<1024x512xbf16>
    %cst = arith.constant dense<0.000000e+00> : vector<2x512xf32>
    %2 = tpu.matmul %0, %1, %cst {dimension_numbers = #tpu.dot_dimension_numbers<[1], [0], [0], [1], [0, 0, 1, 1], [], []>} : vector<2x1024xbf16>, vector<1024x512xbf16>, vector<2x512xf32> -> vector<2x512xf32>
    %c0_3 = arith.constant 0 : index
    %c0_4 = arith.constant 0 : index
    %3 = vector.load %arg3[%c0_3, %c0_4] : memref<1x512xf32, #tpu.memory_space<vmem>>, vector<1x512xf32>
    %4 = vector.broadcast %3 : vector<1x512xf32> to vector<2x512xf32>
    %5 = arith.addf %2, %4 : vector<2x512xf32>
    %cst_5 = arith.constant 0.000000e+00 : f32
    %6 = vector.broadcast %cst_5 : f32 to vector<2x512xf32>
    %7 = arith.maximumf %5, %6 : vector<2x512xf32>
    %8 = arith.truncf %7 : vector<2x512xf32> to vector<2x512xbf16>
    %c0_6 = arith.constant 0 : index
    %c0_7 = arith.constant 0 : index
    %9 = vector.load %arg4[%c0_6, %c0_7] : memref<512x512xbf16, #tpu.memory_space<vmem>>, vector<512x512xbf16>
    %cst_8 = arith.constant dense<0.000000e+00> : vector<2x512xf32>
    %10 = tpu.matmul %8, %9, %cst_8 {dimension_numbers = #tpu.dot_dimension_numbers<[1], [0], [0], [1], [0, 0, 1, 1], [], []>} : vector<2x512xbf16>, vector<512x512xbf16>, vector<2x512xf32> -> vector<2x512xf32>
    %c0_9 = arith.constant 0 : index
    %c0_10 = arith.constant 0 : index
    %11 = vector.load %arg5[%c0_9, %c0_10] : memref<1x512xf32, #tpu.memory_space<vmem>>, vector<1x512xf32>
    %12 = vector.broadcast %11 : vector<1x512xf32> to vector<2x512xf32>
    %13 = arith.addf %10, %12 : vector<2x512xf32>
    %cst_11 = arith.constant 0.000000e+00 : f32
    %14 = vector.broadcast %cst_11 : f32 to vector<2x512xf32>
    %15 = arith.maximumf %13, %14 : vector<2x512xf32>
    %16 = arith.truncf %15 : vector<2x512xf32> to vector<2x512xbf16>
    %c0_12 = arith.constant 0 : index
    %c0_13 = arith.constant 0 : index
    %17 = vector.load %arg6[%c0_12, %c0_13] : memref<512x128xbf16, #tpu.memory_space<vmem>>, vector<512x128xbf16>
    %cst_14 = arith.constant dense<0.000000e+00> : vector<2x128xf32>
    %18 = tpu.matmul %16, %17, %cst_14 {dimension_numbers = #tpu.dot_dimension_numbers<[1], [0], [0], [1], [0, 0, 1, 1], [], []>} : vector<2x512xbf16>, vector<512x128xbf16>, vector<2x128xf32> -> vector<2x128xf32>
    %c0_15 = arith.constant 0 : index
    %c0_16 = arith.constant 0 : index
    %19 = vector.load %arg7[%c0_15, %c0_16] : memref<1x128xf32, #tpu.memory_space<vmem>>, vector<1x128xf32>
    %20 = vector.broadcast %19 : vector<1x128xf32> to vector<2x128xf32>
    %21 = arith.addf %18, %20 : vector<2x128xf32>
    %c0_17 = arith.constant 0 : index
    %c0_18 = arith.constant 0 : index
    %22 = vector.load %arg8[%c0_17, %c0_18] : memref<2x128xf32, #tpu.memory_space<vmem>>, vector<2x128xf32>
    tpu.vector_store %arg8[%c0_17, %c0_18], %21 {strides = array<i32>} : memref<2x128xf32, #tpu.memory_space<vmem>>, vector<2x128xf32>,
    return
  }
  func.func @transform_0(%arg0: i32) -> (i32, i32) {
    %c0_i32 = arith.constant 0 : i32
    %c0_i32_0 = arith.constant 0 : i32
    return %arg0, %c0_i32 : i32, i32
  }
  func.func @transform_1(%arg0: i32) -> (i32, i32) {
    %c0_i32 = arith.constant 0 : i32
    %c0_i32_0 = arith.constant 0 : i32
    %c0_i32_1 = arith.constant 0 : i32
    return %c0_i32, %c0_i32_0 : i32, i32
  }
  func.func @transform_2(%arg0: i32) -> (i32, i32) {
    %c0_i32 = arith.constant 0 : i32
    %c0_i32_0 = arith.constant 0 : i32
    %c0_i32_1 = arith.constant 0 : i32
    return %c0_i32, %c0_i32_0 : i32, i32
  }
  func.func @transform_3(%arg0: i32) -> (i32, i32) {
    %c0_i32 = arith.constant 0 : i32
    %c0_i32_0 = arith.constant 0 : i32
    %c0_i32_1 = arith.constant 0 : i32
    return %c0_i32, %c0_i32_0 : i32, i32
  }
  func.func @transform_4(%arg0: i32) -> (i32, i32) {
    %c0_i32 = arith.constant 0 : i32
    %c0_i32_0 = arith.constant 0 : i32
    %c0_i32_1 = arith.constant 0 : i32
    return %c0_i32, %c0_i32_0 : i32, i32
  }
  func.func @transform_5(%arg0: i32) -> (i32, i32) {
    %c0_i32 = arith.constant 0 : i32
    %c0_i32_0 = arith.constant 0 : i32
    %c0_i32_1 = arith.constant 0 : i32
    return %c0_i32, %c0_i32_0 : i32, i32
  }
  func.func @transform_6(%arg0: i32) -> (i32, i32) {
    %c0_i32 = arith.constant 0 : i32
    %c0_i32_0 = arith.constant 0 : i32
    %c0_i32_1 = arith.constant 0 : i32
    return %c0_i32, %c0_i32_0 : i32, i32
  }
  func.func @transform_7(%arg0: i32) -> (i32, i32) {
    %c0_i32 = arith.constant 0 : i32
    %c0_i32_0 = arith.constant 0 : i32
    return %arg0, %c0_i32 : i32, i32
  }
}

</mosaic_0001>

<bundles_post_ra>
// kernel: tpu_custom_call.1
= control target key start
LH: loop header
LB: loop body
LE: loop exit
PB: predicated region body
PF: predicated region fallthrough
CT: control target
= control target key end

     0   :  { %12 = vsyncpa [#allocation3], 0  ;;  %s4778_s0 = inlined_call_operand.hbm [shape: bf16[2,1024], index: 0, kind: input, shape index: {}]   ;;  %s4779_s1 = inlined_call_operand.hbm [shape: bf16[1024,512], index: 1, kind: input, shape index: {}]   ;;  %s4780_s2 = inlined_call_operand.vmem [shape: f32[1,512], index: 2, kind: input, shape index: {}]   ;;  %s4781_s3 = inlined_call_operand.hbm [shape: bf16[512,512], index: 3, kind: input, shape index: {}]   ;;  %s4782_s4 = inlined_call_operand.vmem [shape: f32[1,512], index: 4, kind: input, shape index: {}]   ;;  %s4783_s5 = inlined_call_operand.hbm [shape: bf16[512,128], index: 5, kind: input, shape index: {}]   ;;  %s4784_s6 = inlined_call_operand.vmem [shape: f32[1,128], index: 6, kind: input, shape index: {}]   ;;  %s4785_s7 = inlined_call_operand.hbm [shape: f32[2,128], index: 7, kind: output, shape index: {}]  }
   0x1   :  { %13 = vsyncpa [#allocation6], 0 }
   0x2   :  { %14 = vsyncpa [#allocation9], 0 }
   0x3   :  { %15 = vsyncpa [#allocation4], 0  ;;  %s4595_s24 = smov [#allocation5]   ;;  %s4477_s28 = scalar_lea.hbm %s4779_s1, 32768 }
   0x4   :  { %s31_s25 = sshll.u32 %s4595_s24, 4  ;;  %p4478_p0 = scmp.ne.s32.totalorder %s4779_s1, %s4477_s28  ;;  %s32_s25 = int_to_ptr.vmem [resolvable:$true] %s31_s25 }
   0x5   :  { %p4481_p1 = scmp.lt.u32.totalorder %s4477_s28, %s4779_s1 }
   0x7   :  { %p4483_p2 = pnand %p4481_p1, %p4478_p0 }
   0x9   :  { %4486 = shalt.err (!%p4483_p2)
}
   0xa   :  { %s4487_s10 = scalar_lea.vmem %s32_s25, 32768  ;;  %p4492_p4 = scmp.lt.s32.totalorder %s32_s25, %s32_s25 }
   0xb   :  { %p4488_p3 = scmp.ne.s32.totalorder %s32_s25, %s4487_s10  ;;  %p4493_p5 = scmp.lt.s32.totalorder %s4487_s10, %s4487_s10 }
   0xd   :  { %p4494_p6 = por %p4493_p5, %p4492_p4 }
   0xf   :  { %p4495_p7 = pnand %p4494_p6, %p4488_p3 }
  0x11   :  { %4498 = shalt.err (!%p4495_p7)
}
  0x12   :  { %s4596_s11 = smov 256   ;;  %s4597_s12 = smov 16  }
  0x13   :  { %37 = dma.hbm_to_vmem [thread:$0]  %s4779_s1, 32768, %s32_s25, [#allocation6], %s4596_s11, %s4596_s11, %s4597_s12  }
  0x14   :  { %s4598_s15 = smov [#allocation2]   ;;  %s4599_s17 = smov [#allocation7]  }
  0x15   :  { %s22_s16 = sshll.u32 %s4598_s15, 4  ;;  %s45_s18 = sshll.u32 %s4599_s17, 4  ;;  %s23_s16 = int_to_ptr.vmem [resolvable:$true] %s22_s16  ;;  %s46_s18 = int_to_ptr.vmem [resolvable:$true] %s45_s18 }
  0x16   :  { %s4499_s21 = scalar_lea.hbm %s4778_s0, 128 }
  0x17   :  { %p4500_p8 = scmp.ne.s32.totalorder %s4778_s0, %s4499_s21  ;;  %p4503_p9 = scmp.lt.u32.totalorder %s4499_s21, %s4778_s0 }
  0x19   :  { %p4505_p10 = pnand %p4503_p9, %p4500_p8 }
  0x1b   :  { %4508 = shalt.err (!%p4505_p10)
}
  0x1c   :  { %s4509_s1 = scalar_lea.vmem %s23_s16, 128  ;;  %p4514_p12 = scmp.lt.s32.totalorder %s23_s16, %s23_s16 }
  0x1d   :  { %p4510_p11 = scmp.ne.s32.totalorder %s23_s16, %s4509_s1  ;;  %p4515_p13 = scmp.lt.s32.totalorder %s4509_s1, %s4509_s1 }
  0x1f   :  { %p4516_p0 = por %p4515_p13, %p4514_p12 }
  0x21   :  { %p4517_p1 = pnand %p4516_p0, %p4510_p11 }
  0x23   :  { %4520 = shalt.err (!%p4517_p1)
}
  0x24   :  { %25 = dma.hbm_to_vmem [thread:$0]  %s4778_s0, 128, %s23_s16, [#allocation3]  }
  0x25   :  { %s4521_s30 = scalar_lea.hbm %s4781_s3, 16384 }
  0x26   :  { %p4522_p2 = scmp.ne.s32.totalorder %s4781_s3, %s4521_s30  ;;  %p4525_p3 = scmp.lt.u32.totalorder %s4521_s30, %s4781_s3 }
  0x28   :  { %p4527_p4 = pnand %p4525_p3, %p4522_p2 }
  0x2a   :  { %4530 = shalt.err (!%p4527_p4)
}
  0x2b   :  { %s4531_s14 = scalar_lea.vmem %s46_s18, 16384  ;;  %p4536_p6 = scmp.lt.s32.totalorder %s46_s18, %s46_s18 }
  0x2c   :  { %p4532_p5 = scmp.ne.s32.totalorder %s46_s18, %s4531_s14  ;;  %p4537_p7 = scmp.lt.s32.totalorder %s4531_s14, %s4531_s14 }
  0x2e   :  { %p4538_p8 = por %p4537_p7, %p4536_p6 }
  0x30   :  { %p4539_p9 = pnand %p4538_p8, %p4532_p5 }
  0x32   :  { %4542 = shalt.err (!%p4539_p9)
}
  0x33   :  { %51 = dma.hbm_to_vmem [thread:$0]  %s4781_s3, 16384, %s46_s18, [#allocation6], %s4596_s11, %s4596_s11, %s4597_s12  }
  0x34   :  { %s4600_s16 = smov [#allocation8]   ;;  %s4543_s21 = scalar_lea.hbm %s4783_s5, 4096 }
  0x35   :  { %s59_s17 = sshll.u32 %s4600_s16, 4  ;;  %p4544_p10 = scmp.ne.s32.totalorder %s4783_s5, %s4543_s21  ;;  %s60_s17 = int_to_ptr.vmem [resolvable:$true] %s59_s17 }
  0x36   :  { %p4547_p11 = scmp.lt.u32.totalorder %s4543_s21, %s4783_s5 }
  0x38   :  { %p4549_p12 = pnand %p4547_p11, %p4544_p10 }
  0x3a   :  { %4552 = shalt.err (!%p4549_p12)
}
  0x3b   :  { %s4553_s1 = scalar_lea.vmem %s60_s17, 4096  ;;  %p4558_p0 = scmp.lt.s32.totalorder %s60_s17, %s60_s17 }
  0x3c   :  { %p4554_p13 = scmp.ne.s32.totalorder %s60_s17, %s4553_s1  ;;  %p4559_p1 = scmp.lt.s32.totalorder %s4553_s1, %s4553_s1 }
  0x3e   :  { %p4560_p2 = por %p4559_p1, %p4558_p0 }
  0x40   :  { %p4561_p3 = pnand %p4560_p2, %p4554_p13 }
  0x42   :  { %4564 = shalt.err (!%p4561_p3)
}
  0x43   :  { %s4601_s3 = smov 64   ;;  %s4602_s11 = smov 4  }
  0x44   :  { %65 = dma.hbm_to_vmem [thread:$0]  %s4783_s5, 4096, %s60_s17, [#allocation9], %s4601_s3, %s4601_s3, %s4602_s11  }
  0x45   :  { %4587 = dma.done.wait [#allocation3], 128  }
  0x46   :  { %4588 = vsyncadd [#allocation3], 4294967168 }
  0x47   :  { %4589 = dma.done.wait [#allocation6], 49152  }
  0x48   :  { %4590 = vsyncadd [#allocation6], 4294918144 }
  0x49   :  { %4591 = dma.done.wait [#allocation9], 4096  }
  0x4a   :  { %4592 = vsyncadd [#allocation9], 4294963200  ;;  %v3868_v0 = vld [vmem:[#allocation5 + $0x4] ss:$16 sps:$4 sm:$0xff]   ;;  %v3870_v1 = vld [vmem:[#allocation5 + $0xc] ss:$16 sps:$4 sm:$0xff]   ;;  %v340_v36 = vlaneseq }
  0x4b   :  { %1698 = vmatprep.subr.bf16.mxu0 %v3868_v0  ;;  %v3872_v2 = vld [vmem:[#allocation5] ss:$16 sps:$4 sm:$0xff]   ;;  %v3873_v3 = vld [vmem:[#allocation5 + $0x8] ss:$16 sps:$4 sm:$0xff]   ;;  %1862 = vmatprep.subr.bf16.mxu1 %v3870_v1  ;;  %v3874_v4 = vld [vmem:[#allocation5 + $0x24] ss:$16 sps:$4 sm:$0xff]  }
  0x4c   :  { %1699 = vmatpush1.bf16.msra.mxu0 %v3872_v2  ;;  %1863 = vmatpush1.bf16.msra.mxu1 %v3873_v3  ;;  %v3876_v5 = vld [vmem:[#allocation5 + $0x2c] ss:$16 sps:$4 sm:$0xff]   ;;  %v3878_v6 = vld [vmem:[#allocation5 + $0x20] ss:$16 sps:$4 sm:$0xff]   ;;  %v3879_v7 = vld [vmem:[#allocation5 + $0x28] ss:$16 sps:$4 sm:$0xff]  }
  0x4d   :  { %1700 = vmatprep.subr.bf16.mxu0 %v3874_v4  ;;  %1864 = vmatprep.subr.bf16.mxu1 %v3876_v5  ;;  %v3880_v8 = vld [vmem:[#allocation5 + $0x44] ss:$16 sps:$4 sm:$0xff]   ;;  %v3882_v9 = vld [vmem:[#allocation5 + $0x4c] ss:$16 sps:$4 sm:$0xff]   ;;  %v3884_v10 = vld [vmem:[#allocation5 + $0x40] ss:$16 sps:$4 sm:$0xff]  }
  0x4e   :  { %v3885_v11 = vld [vmem:[#allocation5 + $0x48] ss:$16 sps:$4 sm:$0xff]   ;;  %v3886_v12 = vld [vmem:[#allocation5 + $0x64] ss:$16 sps:$4 sm:$0xff]   ;;  %v3888_v13 = vld [vmem:[#allocation5 + $0x6c] ss:$16 sps:$4 sm:$0xff]  }
  0x4f   :  { %v3890_v14 = vld [vmem:[#allocation5 + $0x60] ss:$16 sps:$4 sm:$0xff]   ;;  %v3891_v15 = vld [vmem:[#allocation5 + $0x68] ss:$16 sps:$4 sm:$0xff]   ;;  %v3892_v16 = vld [vmem:[#allocation5 + $0x84] ss:$16 sps:$4 sm:$0xff]  }
  0x50   :  { %1701 = vmatpush1.bf16.msra.mxu0 %v3878_v6  ;;  %1865 = vmatpush1.bf16.msra.mxu1 %v3879_v7  ;;  %v3894_v17 = vld [vmem:[#allocation5 + $0x8c] ss:$16 sps:$4 sm:$0xff]   ;;  %v3896_v18 = vld [vmem:[#allocation5 + $0x80] ss:$16 sps:$4 sm:$0xff]   ;;  %v3897_v19 = vld [vmem:[#allocation5 + $0x88] ss:$16 sps:$4 sm:$0xff]  }
  0x51   :  { %1702 = vmatprep.subr.bf16.mxu0 %v3880_v8  ;;  %1866 = vmatprep.subr.bf16.mxu1 %v3882_v9  ;;  %v3898_v20 = vld [vmem:[#allocation5 + $0xa4] ss:$16 sps:$4 sm:$0xff]   ;;  %v3900_v21 = vld [vmem:[#allocation5 + $0xac] ss:$16 sps:$4 sm:$0xff]   ;;  %v3902_v22 = vld [vmem:[#allocation5 + $0xa0] ss:$16 sps:$4 sm:$0xff]  }
  0x52   :  { %v3903_v23 = vld [vmem:[#allocation5 + $0xa8] ss:$16 sps:$4 sm:$0xff]   ;;  %v3904_v24 = vld [vmem:[#allocation5 + $0xc4] ss:$16 sps:$4 sm:$0xff]   ;;  %v3906_v25 = vld [vmem:[#allocation5 + $0xcc] ss:$16 sps:$4 sm:$0xff]  }
  0x53   :  { %v3908_v26 = vld [vmem:[#allocation5 + $0xc0] ss:$16 sps:$4 sm:$0xff]   ;;  %v3909_v27 = vld [vmem:[#allocation5 + $0xc8] ss:$16 sps:$4 sm:$0xff]   ;;  %v3910_v28 = vld [vmem:[#allocation5 + $0xe4] ss:$16 sps:$4 sm:$0xff]  }
  0x54   :  { %1703 = vmatpush1.bf16.msra.mxu0 %v3884_v10  ;;  %1867 = vmatpush1.bf16.msra.mxu1 %v3885_v11  ;;  %v3912_v29 = vld [vmem:[#allocation5 + $0xec] ss:$16 sps:$4 sm:$0xff]   ;;  %v3914_v30 = vld [vmem:[#allocation5 + $0xe0] ss:$16 sps:$4 sm:$0xff]   ;;  %v3915_v31 = vld [vmem:[#allocation5 + $0xe8] ss:$16 sps:$4 sm:$0xff]  }
  0x55   :  { %1704 = vmatprep.subr.bf16.mxu0 %v3886_v12  ;;  %1868 = vmatprep.subr.bf16.mxu1 %v3888_v13  ;;  %v3916_v32 = vld [vmem:[#allocation5 + $0x104] ss:$16 sps:$4 sm:$0xff]   ;;  %v3918_v33 = vld [vmem:[#allocation5 + $0x10c] ss:$16 sps:$4 sm:$0xff]   ;;  %v3920_v34 = vld [vmem:[#allocation5 + $0x100] ss:$16 sps:$4 sm:$0xff]  }
  0x56   :  { %v3921_v35 = vld [vmem:[#allocation5 + $0x108] ss:$16 sps:$4 sm:$0xff]   ;;  %v4603_v37 = vmov 1966171168   ;;  %v3922_v39 = vld [vmem:[#allocation5 + $0x124] ss:$16 sps:$4 sm:$0xff]  }
  0x57   :  { %v363_v38 = vunpack.c.l.s4 %v4603_v37  ;;  %v3924_v40 = vld [vmem:[#allocation5 + $0x12c] ss:$16 sps:$4 sm:$0xff]   ;;  %v3926_v41 = vld [vmem:[#allocation5 + $0x120] ss:$16 sps:$4 sm:$0xff]   ;;  %v4699_v42 = vshrl.u32 %v340_v36, 7  ;;  %s4604_s29 = smov [#allocation10]  }
  0x58   :  { %1705 = vmatpush1.bf16.msra.mxu0 %v3890_v14  ;;  %1869 = vmatpush1.bf16.msra.mxu1 %v3891_v15  ;;  %v3927_v44 = vld [vmem:[#allocation5 + $0x128] ss:$16 sps:$4 sm:$0xff]   ;;  %v3928_v45 = vld [vmem:[#allocation5 + $0x144] ss:$16 sps:$4 sm:$0xff]   ;;  %v3930_v46 = vld [vmem:[#allocation5 + $0x14c] ss:$16 sps:$4 sm:$0xff]  }
  0x59   :  { %1706 = vmatprep.subr.bf16.mxu0 %v3892_v16  ;;  %1870 = vmatprep.subr.bf16.mxu1 %v3894_v17  ;;  %v364_v43 = vunpack.c.0.s8 %v363_v38  ;;  %v3932_v47 = vld [vmem:[#allocation5 + $0x140] ss:$16 sps:$4 sm:$0xff]   ;;  %v3933_v48 = vld [vmem:[#allocation5 + $0x148] ss:$16 sps:$4 sm:$0xff]   ;;  %v3934_v50 = vld [vmem:[#allocation5 + $0x164] ss:$16 sps:$4 sm:$0xff]  }
  0x5a   :  { %v3936_v51 = vld [vmem:[#allocation5 + $0x16c] ss:$16 sps:$4 sm:$0xff]   ;;  %v3938_v53 = vld [vmem:[#allocation5 + $0x160] ss:$16 sps:$4 sm:$0xff]   ;;  %v3939_v55 = vld [vmem:[#allocation5 + $0x168] ss:$16 sps:$4 sm:$0xff]  }
  0x5b   :  { %v4702_v49 = vsub.s32 %v364_v43, %v4699_v42  ;;  %v81_v52 = vld [vmem:[#allocation2] sm:$0xff]  ;;  %v3940_v56 = vld [vmem:[#allocation5 + $0x184] ss:$16 sps:$4 sm:$0xff]   ;;  %v3944_v59 = vld [vmem:[#allocation5 + $0x180] ss:$16 sps:$4 sm:$0xff]   ;;  %s3346_s30 = sshll.u32 %s4604_s29, 4  ;;  %s3347_s30 = int_to_ptr.vmem [resolvable:$true] %s3346_s30 }
  0x5c   :  { %1707 = vmatpush1.bf16.msra.mxu0 %v3896_v18  ;;  %1871 = vmatpush1.bf16.msra.mxu1 %v3897_v19  ;;  %v3942_v57 = vld [vmem:[#allocation5 + $0x18c] ss:$16 sps:$4 sm:$0xff]   ;;  %v3945_v61 = vld [vmem:[#allocation5 + $0x188] ss:$16 sps:$4 sm:$0xff]   ;;  %v3946_v62 = vld [vmem:[#allocation5 + $0x1a4] ss:$16 sps:$4 sm:$0xff]   ;;  %v361_v9 = vcombine.high %v81_v52, %v81_v52  ;;  %p4570_p5 = scmp.lt.s32.totalorder %s3347_s30, %s3347_s30 }
  0x5d   :  { %1708 = vmatprep.subr.bf16.mxu0 %v3898_v20  ;;  %1872 = vmatprep.subr.bf16.mxu1 %v3900_v21  ;;  %v368_v54 = vrot.slane %v81_v52, %v4702_v49  ;;  %v3948_v63 = vld [vmem:[#allocation5 + $0x1ac] ss:$16 sps:$4 sm:$0xff]   ;;  %v3950_v0 = vld [vmem:[#allocation5 + $0x1a0] ss:$16 sps:$4 sm:$0xff]   ;;  %v3951_v1 = vld [vmem:[#allocation5 + $0x1a8] ss:$16 sps:$4 sm:$0xff]  }
  0x5e   :  { %v3952_v2 = vld [vmem:[#allocation5 + $0x1c4] ss:$16 sps:$4 sm:$0xff]   ;;  %v3954_v3 = vld [vmem:[#allocation5 + $0x1cc] ss:$16 sps:$4 sm:$0xff]   ;;  %v3956_v4 = vld [vmem:[#allocation5 + $0x1c0] ss:$16 sps:$4 sm:$0xff]   ;;  %v375_v13 = vrot.slane %v361_v9, %v4702_v49 }
  0x5f   :  { %v376_v58 = vcombine.high %v368_v54, %v368_v54  ;;  %v3957_v5 = vld [vmem:[#allocation5 + $0x1c8] ss:$16 sps:$4 sm:$0xff]   ;;  %v3958_v6 = vld [vmem:[#allocation5 + $0x1e4] ss:$16 sps:$4 sm:$0xff]   ;;  %v3960_v7 = vld [vmem:[#allocation5 + $0x1ec] ss:$16 sps:$4 sm:$0xff]   ;;  %v4708_v15 = vrot.slane %v368_v54, %v4702_v49 }
  0x60   :  { %1709 = vmatpush1.bf16.msra.mxu0 %v3902_v22  ;;  %1873 = vmatpush1.bf16.msra.mxu1 %v3903_v23  ;;  %v3962_v8 = vld [vmem:[#allocation5 + $0x1e0] ss:$16 sps:$4 sm:$0xff]   ;;  %v3963_v10 = vld [vmem:[#allocation5 + $0x1e8] ss:$16 sps:$4 sm:$0xff]   ;;  %v3966_v11 = vld [vmem:[#allocation5 + $0x204] ss:$16 sps:$4 sm:$0xff]   ;;  %v377_v16 = vcombine.high %v375_v13, %v375_v13  ;;  %v4714_v21 = vrot.slane %v375_v13, %v4702_v49 }
  0x61   :  { %1710 = vmatprep.subr.bf16.mxu0 %v3904_v24  ;;  %1874 = vmatprep.subr.bf16.mxu1 %v3906_v25  ;;  %v398_v60 = vrot.slane %v376_v58, %v4702_v49  ;;  %v3969_v12 = vld [vmem:[#allocation5 + $0x20c] ss:$16 sps:$4 sm:$0xff]   ;;  %v3964_v14 = vld [vmem:[#allocation5 + $0x200] ss:$16 sps:$4 sm:$0xff]   ;;  %v3967_v17 = vld [vmem:[#allocation5 + $0x208] ss:$16 sps:$4 sm:$0xff]  }
  0x62   :  { %v3972_v18 = vld [vmem:[#allocation5 + $0x224] ss:$16 sps:$4 sm:$0xff]   ;;  %v3975_v19 = vld [vmem:[#allocation5 + $0x22c] ss:$16 sps:$4 sm:$0xff]   ;;  %v4711_v20 = vrot.slane %v377_v16, %v4702_v49  ;;  %v3970_v23 = vld [vmem:[#allocation5 + $0x220] ss:$16 sps:$4 sm:$0xff]  }
  0x63   :  { %1730 = vmatprep.mubr.bf16.mxu0 %v398_v60  ;;  %1894 = vmatprep.mubr.bf16.mxu1 %v398_v60  ;;  %v408_v22 = vcombine.high %v398_v60, %v398_v60  ;;  %v3973_v24 = vld [vmem:[#allocation5 + $0x228] ss:$16 sps:$4 sm:$0xff]   ;;  %v3978_v25 = vld [vmem:[#allocation5 + $0x244] ss:$16 sps:$4 sm:$0xff]   ;;  %v3999_v38 = vld [vmem:[#allocation5 + $0x2ac] ss:$16 sps:$4 sm:$0xff]  }
  0x64   :  { %1711 = vmatpush1.bf16.msra.mxu0 %v3908_v26  ;;  %1875 = vmatpush1.bf16.msra.mxu1 %v3909_v27  ;;  %v3981_v26 = vld [vmem:[#allocation5 + $0x24c] ss:$16 sps:$4 sm:$0xff]   ;;  %v3976_v27 = vld [vmem:[#allocation5 + $0x240] ss:$16 sps:$4 sm:$0xff]   ;;  %v3991_v36 = vld [vmem:[#allocation5 + $0x288] ss:$16 sps:$4 sm:$0xff]  }
  0x65   :  { %1712 = vmatprep.subr.bf16.mxu0 %v3910_v28  ;;  %1876 = vmatprep.subr.bf16.mxu1 %v3912_v29  ;;  %v3979_v28 = vld [vmem:[#allocation5 + $0x248] ss:$16 sps:$4 sm:$0xff]   ;;  %v3984_v29 = vld [vmem:[#allocation5 + $0x264] ss:$16 sps:$4 sm:$0xff]   ;;  %v4005_v43 = vld [vmem:[#allocation5 + $0x2cc] ss:$16 sps:$4 sm:$0xff]  }
  0x66   :  { %v3996_v37 = vld [vmem:[#allocation5 + $0x2a4] ss:$16 sps:$4 sm:$0xff]   ;;  %v4009_v49 = vld [vmem:[#allocation5 + $0x2e8] ss:$16 sps:$4 sm:$0xff]   ;;  %v4012_v52 = vld [vmem:[#allocation5 + $0x300] ss:$16 sps:$4 sm:$0xff]  }
  0x67   :  { %v4020_v54 = vld [vmem:[#allocation5 + $0x324] ss:$16 sps:$4 sm:$0xff]   ;;  %v4024_v60 = vld [vmem:[#allocation5 + $0x340] ss:$16 sps:$4 sm:$0xff]   ;;  %v4045_v9 = vld [vmem:[#allocation5 + $0x3a8] ss:$16 sps:$4 sm:$0xff]  }
  0x68   :  { %1713 = vmatpush1.bf16.msra.mxu0 %v3914_v30  ;;  %1877 = vmatpush1.bf16.msra.mxu1 %v3915_v31  ;;  %v3987_v30 = vld [vmem:[#allocation5 + $0x26c] ss:$16 sps:$4 sm:$0xff]   ;;  %v3982_v31 = vld [vmem:[#allocation5 + $0x260] ss:$16 sps:$4 sm:$0xff]   ;;  %v4026_v58 = vld [vmem:[#allocation5 + $0x344] ss:$16 sps:$4 sm:$0xff]  }
  0x69   :  { %1714 = vmatprep.subr.bf16.mxu0 %v3916_v32  ;;  %1878 = vmatprep.subr.bf16.mxu1 %v3918_v33  ;;  %v3985_v32 = vld [vmem:[#allocation5 + $0x268] ss:$16 sps:$4 sm:$0xff]   ;;  %v3990_v33 = vld [vmem:[#allocation5 + $0x284] ss:$16 sps:$4 sm:$0xff]   ;;  %v4059_v16 = vld [vmem:[#allocation5 + $0x3ec] ss:$16 sps:$4 sm:$0xff]  }
  0x6a   :  { %v4051_v13 = vld [vmem:[#allocation5 + $0x3c8] ss:$16 sps:$4 sm:$0xff]   ;;  %s4565_s8 = scalar_lea.vmem %s3347_s30, 32 }
  0x6b   :  { %p4566_p4 = scmp.ne.s32.totalorder %s3347_s30, %s4565_s8  ;;  %p4571_p6 = scmp.lt.s32.totalorder %s4565_s8, %s4565_s8 }
  0x6c   :  { %1715 = vmatpush1.bf16.msra.mxu0 %v3920_v34  ;;  %1879 = vmatpush1.bf16.msra.mxu1 %v3921_v35  ;;  %v3993_v34 = vld [vmem:[#allocation5 + $0x28c] ss:$16 sps:$4 sm:$0xff]   ;;  %v3988_v35 = vld [vmem:[#allocation5 + $0x280] ss:$16 sps:$4 sm:$0xff]  }
  0x6d   :  { %1716 = vmatprep.subr.bf16.mxu0 %v3922_v39  ;;  %1880 = vmatprep.subr.bf16.mxu1 %v3924_v40  ;;  %v3994_v39 = vld [vmem:[#allocation5 + $0x2a0] ss:$16 sps:$4 sm:$0xff]   ;;  %v3997_v40 = vld [vmem:[#allocation5 + $0x2a8] ss:$16 sps:$4 sm:$0xff]   ;;  %p4572_p7 = por %p4571_p6, %p4570_p5 }
  0x6f   :  { %p4573_p8 = pnand %p4572_p7, %p4566_p4 }
  0x70   :  { %1717 = vmatpush1.bf16.msra.mxu0 %v3926_v41  ;;  %1881 = vmatpush1.bf16.msra.mxu1 %v3927_v44  ;;  %v4002_v41 = vld [vmem:[#allocation5 + $0x2c4] ss:$16 sps:$4 sm:$0xff]   ;;  %v4000_v44 = vld [vmem:[#allocation5 + $0x2c0] ss:$16 sps:$4 sm:$0xff]  }
  0x71   :  { %1718 = vmatprep.subr.bf16.mxu0 %v3928_v45  ;;  %1882 = vmatprep.subr.bf16.mxu1 %v3930_v46  ;;  %v4003_v45 = vld [vmem:[#allocation5 + $0x2c8] ss:$16 sps:$4 sm:$0xff]   ;;  %v4008_v46 = vld [vmem:[#allocation5 + $0x2e4] ss:$16 sps:$4 sm:$0xff]  }
  0x74   :  { %1719 = vmatpush1.bf16.msra.mxu0 %v3932_v47  ;;  %1883 = vmatpush1.bf16.msra.mxu1 %v3933_v48  ;;  %v4011_v47 = vld [vmem:[#allocation5 + $0x2ec] ss:$16 sps:$4 sm:$0xff]   ;;  %v4006_v48 = vld [vmem:[#allocation5 + $0x2e0] ss:$16 sps:$4 sm:$0xff]  }
  0x75   :  { %1720 = vmatprep.subr.bf16.mxu0 %v3934_v50  ;;  %1884 = vmatprep.subr.bf16.mxu1 %v3936_v51  ;;  %v4014_v50 = vld [vmem:[#allocation5 + $0x304] ss:$16 sps:$4 sm:$0xff]   ;;  %v4017_v51 = vld [vmem:[#allocation5 + $0x30c] ss:$16 sps:$4 sm:$0xff]  }
  0x78   :  { %1721 = vmatpush1.bf16.msra.mxu0 %v3938_v53  ;;  %1885 = vmatpush1.bf16.msra.mxu1 %v3939_v55  ;;  %v4015_v53 = vld [vmem:[#allocation5 + $0x308] ss:$16 sps:$4 sm:$0xff]   ;;  %v4023_v55 = vld [vmem:[#allocation5 + $0x32c] ss:$16 sps:$4 sm:$0xff]  }
  0x79   :  { %1722 = vmatprep.subr.bf16.mxu0 %v3940_v56  ;;  %1886 = vmatprep.subr.bf16.mxu1 %v3942_v57  ;;  %v4018_v56 = vld [vmem:[#allocation5 + $0x320] ss:$16 sps:$4 sm:$0xff]   ;;  %v4021_v57 = vld [vmem:[#allocation5 + $0x328] ss:$16 sps:$4 sm:$0xff]  }
  0x7c   :  { %1723 = vmatpush1.bf16.msra.mxu0 %v3944_v59  ;;  %1887 = vmatpush1.bf16.msra.mxu1 %v3945_v61  ;;  %v4029_v59 = vld [vmem:[#allocation5 + $0x34c] ss:$16 sps:$4 sm:$0xff]   ;;  %v4027_v61 = vld [vmem:[#allocation5 + $0x348] ss:$16 sps:$4 sm:$0xff]  }
  0x7d   :  { %1724 = vmatprep.subr.bf16.mxu0 %v3946_v62  ;;  %1888 = vmatprep.subr.bf16.mxu1 %v3948_v63  ;;  %v4032_v62 = vld [vmem:[#allocation5 + $0x364] ss:$16 sps:$4 sm:$0xff]   ;;  %v4035_v63 = vld [vmem:[#allocation5 + $0x36c] ss:$16 sps:$4 sm:$0xff]  }
  0x80   :  { %1725 = vmatpush1.bf16.msra.mxu0 %v3950_v0  ;;  %1889 = vmatpush1.bf16.msra.mxu1 %v3951_v1  ;;  %v4030_v0 = vld [vmem:[#allocation5 + $0x360] ss:$16 sps:$4 sm:$0xff]   ;;  %v4033_v1 = vld [vmem:[#allocation5 + $0x368] ss:$16 sps:$4 sm:$0xff]  }
  0x81   :  { %1726 = vmatprep.subr.bf16.mxu0 %v3952_v2  ;;  %1890 = vmatprep.subr.bf16.mxu1 %v3954_v3  ;;  %v4038_v2 = vld [vmem:[#allocation5 + $0x384] ss:$16 sps:$4 sm:$0xff]   ;;  %v4041_v3 = vld [vmem:[#allocation5 + $0x38c] ss:$16 sps:$4 sm:$0xff]  }
  0x84   :  { %1727 = vmatpush1.bf16.msra.mxu0 %v3956_v4  ;;  %1891 = vmatpush1.bf16.msra.mxu1 %v3957_v5  ;;  %v4036_v4 = vld [vmem:[#allocation5 + $0x380] ss:$16 sps:$4 sm:$0xff]   ;;  %v4039_v5 = vld [vmem:[#allocation5 + $0x388] ss:$16 sps:$4 sm:$0xff]  }
  0x85   :  { %1728 = vmatprep.subr.bf16.mxu0 %v3958_v6  ;;  %1892 = vmatprep.subr.bf16.mxu1 %v3960_v7  ;;  %v4044_v6 = vld [vmem:[#allocation5 + $0x3a4] ss:$16 sps:$4 sm:$0xff]   ;;  %v4047_v7 = vld [vmem:[#allocation5 + $0x3ac] ss:$16 sps:$4 sm:$0xff]  }
  0x88   :  { %1729 = vmatpush1.bf16.msra.mxu0 %v3962_v8  ;;  %1893 = vmatpush1.bf16.msra.mxu1 %v3963_v10  ;;  %v4042_v8 = vld [vmem:[#allocation5 + $0x3a0] ss:$16 sps:$4 sm:$0xff]   ;;  %v4050_v10 = vld [vmem:[#allocation5 + $0x3c4] ss:$16 sps:$4 sm:$0xff]  }
  0x89   :  { %1739 = vmatprep.subr.bf16.mxu0 %v3966_v11  ;;  %1903 = vmatprep.subr.bf16.mxu1 %v3969_v12  ;;  %v4053_v11 = vld [vmem:[#allocation5 + $0x3cc] ss:$16 sps:$4 sm:$0xff]   ;;  %v4048_v12 = vld [vmem:[#allocation5 + $0x3c0] ss:$16 sps:$4 sm:$0xff]  }
  0x8b   :  { %1731 = vmatmul.mubr.bf16.vlgmr.msra.gmra.mrb[0].mxu0 %v4708_v15  ;;  %1895 = vmatmul.mubr.bf16.vlgmr.msra.gmra.mrb[0].mxu1 %v4708_v15 }
  0x8c   :  { %1740 = vmatpush1.bf16.msra.mxu0 %v3964_v14  ;;  %1904 = vmatpush1.bf16.msra.mxu1 %v3967_v17  ;;  %v4056_v14 = vld [vmem:[#allocation5 + $0x3e4] ss:$16 sps:$4 sm:$0xff]   ;;  %v4054_v17 = vld [vmem:[#allocation5 + $0x3e0] ss:$16 sps:$4 sm:$0xff]  }
  0x8d   :  { %1741 = vmatprep.subr.bf16.mxu0 %v3972_v18  ;;  %1905 = vmatprep.subr.bf16.mxu1 %v3975_v19  ;;  %v4057_v18 = vld [vmem:[#allocation5 + $0x3e8] ss:$16 sps:$4 sm:$0xff]   ;;  %v4062_v19 = vld [vmem:[#allocation5 + $0x404] ss:$16 sps:$4 sm:$0xff]  }
  0x8e   :  { %1771 = vmatprep.mubr.bf16.mxu0 %v408_v22  ;;  %1935 = vmatprep.mubr.bf16.mxu1 %v408_v22  ;;  %v4065_v22 = vld [vmem:[#allocation5 + $0x40c] ss:$16 sps:$4 sm:$0xff]  }
  0x90   :  { %1742 = vmatpush1.bf16.msra.mxu0 %v3970_v23  ;;  %1906 = vmatpush1.bf16.msra.mxu1 %v3973_v24  ;;  %v4060_v23 = vld [vmem:[#allocation5 + $0x400] ss:$16 sps:$4 sm:$0xff]   ;;  %v406_v24 = vcombine.high %v4708_v15, %v4708_v15 }
  0x91   :  { %1743 = vmatprep.subr.bf16.mxu0 %v3978_v25  ;;  %1907 = vmatprep.subr.bf16.mxu1 %v3981_v26  ;;  %v4063_v25 = vld [vmem:[#allocation5 + $0x408] ss:$16 sps:$4 sm:$0xff]   ;;  %v4068_v26 = vld [vmem:[#allocation5 + $0x424] ss:$16 sps:$4 sm:$0xff]   ;;  %v4072_v15 = vld [vmem:[#allocation5 + $0x440] ss:$16 sps:$4 sm:$0xff]  }
  0x94   :  { %1744 = vmatpush1.bf16.msra.mxu0 %v3976_v27  ;;  %1908 = vmatpush1.bf16.msra.mxu1 %v3979_v28  ;;  %v4071_v27 = vld [vmem:[#allocation5 + $0x42c] ss:$16 sps:$4 sm:$0xff]   ;;  %v4066_v28 = vld [vmem:[#allocation5 + $0x420] ss:$16 sps:$4 sm:$0xff]  }
  0x95   :  { %1745 = vmatprep.subr.bf16.mxu0 %v3984_v29  ;;  %1909 = vmatprep.subr.bf16.mxu1 %v3987_v30  ;;  %v4069_v29 = vld [vmem:[#allocation5 + $0x428] ss:$16 sps:$4 sm:$0xff]   ;;  %v4074_v30 = vld [vmem:[#allocation5 + $0x444] ss:$16 sps:$4 sm:$0xff]  }
  0x98   :  { %1746 = vmatpush1.bf16.msra.mxu0 %v3982_v31  ;;  %1910 = vmatpush1.bf16.msra.mxu1 %v3985_v32  ;;  %v4077_v31 = vld [vmem:[#allocation5 + $0x44c] ss:$16 sps:$4 sm:$0xff]   ;;  %v4075_v32 = vld [vmem:[#allocation5 + $0x448] ss:$16 sps:$4 sm:$0xff]  }
  0x99   :  { %1747 = vmatprep.subr.bf16.mxu0 %v3990_v33  ;;  %1911 = vmatprep.subr.bf16.mxu1 %v3993_v34  ;;  %v4080_v33 = vld [vmem:[#allocation5 + $0x464] ss:$16 sps:$4 sm:$0xff]   ;;  %v4083_v34 = vld [vmem:[#allocation5 + $0x46c] ss:$16 sps:$4 sm:$0xff]  }
  0x9c   :  { %1748 = vmatpush1.bf16.msra.mxu0 %v3988_v35  ;;  %1912 = vmatpush1.bf16.msra.mxu1 %v3991_v36  ;;  %v4078_v35 = vld [vmem:[#allocation5 + $0x460] ss:$16 sps:$4 sm:$0xff]   ;;  %v4081_v36 = vld [vmem:[#allocation5 + $0x468] ss:$16 sps:$4 sm:$0xff]  }
  0x9d   :  { %1749 = vmatprep.subr.bf16.mxu0 %v3996_v37  ;;  %1913 = vmatprep.subr.bf16.mxu1 %v3999_v38  ;;  %v4086_v37 = vld [vmem:[#allocation5 + $0x484] ss:$16 sps:$4 sm:$0xff]   ;;  %v4089_v38 = vld [vmem:[#allocation5 + $0x48c] ss:$16 sps:$4 sm:$0xff]  }
  0xa0   :  { %1750 = vmatpush1.bf16.msra.mxu0 %v3994_v39  ;;  %1914 = vmatpush1.bf16.msra.mxu1 %v3997_v40  ;;  %v4084_v39 = vld [vmem:[#allocation5 + $0x480] ss:$16 sps:$4 sm:$0xff]   ;;  %v4087_v40 = vld [vmem:[#allocation5 + $0x488] ss:$16 sps:$4 sm:$0xff]  }
  0xa1   :  { %1751 = vmatprep.subr.bf16.mxu0 %v4002_v41  ;;  %1915 = vmatprep.subr.bf16.mxu1 %v4005_v43  ;;  %v4092_v41 = vld [vmem:[#allocation5 + $0x4a4] ss:$16 sps:$4 sm:$0xff]   ;;  %v4095_v43 = vld [vmem:[#allocation5 + $0x4ac] ss:$16 sps:$4 sm:$0xff]  }
  0xa4   :  { %1752 = vmatpush1.bf16.msra.mxu0 %v4000_v44  ;;  %1916 = vmatpush1.bf16.msra.mxu1 %v4003_v45  ;;  %v4090_v44 = vld [vmem:[#allocation5 + $0x4a0] ss:$16 sps:$4 sm:$0xff]   ;;  %v4093_v45 = vld [vmem:[#allocation5 + $0x4a8] ss:$16 sps:$4 sm:$0xff]  }
  0xa5   :  { %1753 = vmatprep.subr.bf16.mxu0 %v4008_v46  ;;  %1917 = vmatprep.subr.bf16.mxu1 %v4011_v47  ;;  %v4098_v46 = vld [vmem:[#allocation5 + $0x4c4] ss:$16 sps:$4 sm:$0xff]   ;;  %v4101_v47 = vld [vmem:[#allocation5 + $0x4cc] ss:$16 sps:$4 sm:$0xff]  }
  0xa8   :  { %1754 = vmatpush1.bf16.msra.mxu0 %v4006_v48  ;;  %1918 = vmatpush1.bf16.msra.mxu1 %v4009_v49  ;;  %v4096_v48 = vld [vmem:[#allocation5 + $0x4c0] ss:$16 sps:$4 sm:$0xff]   ;;  %v4099_v49 = vld [vmem:[#allocation5 + $0x4c8] ss:$16 sps:$4 sm:$0xff]  }
  0xa9   :  { %1755 = vmatprep.subr.bf16.mxu0 %v4014_v50  ;;  %1919 = vmatprep.subr.bf16.mxu1 %v4017_v51  ;;  %v4104_v50 = vld [vmem:[#allocation5 + $0x4e4] ss:$16 sps:$4 sm:$0xff]   ;;  %v4107_v51 = vld [vmem:[#allocation5 + $0x4ec] ss:$16 sps:$4 sm:$0xff]  }
  0xac   :  { %1756 = vmatpush1.bf16.msra.mxu0 %v4012_v52  ;;  %1920 = vmatpush1.bf16.msra.mxu1 %v4015_v53  ;;  %v4102_v52 = vld [vmem:[#allocation5 + $0x4e0] ss:$16 sps:$4 sm:$0xff]   ;;  %v4105_v53 = vld [vmem:[#allocation5 + $0x4e8] ss:$16 sps:$4 sm:$0xff]  }
  0xad   :  { %1757 = vmatprep.subr.bf16.mxu0 %v4020_v54  ;;  %1921 = vmatprep.subr.bf16.mxu1 %v4023_v55  ;;  %v4110_v54 = vld [vmem:[#allocation5 + $0x504] ss:$16 sps:$4 sm:$0xff]   ;;  %v4113_v55 = vld [vmem:[#allocation5 + $0x50c] ss:$16 sps:$4 sm:$0xff]  }
  0xb0   :  { %1758 = vmatpush1.bf16.msra.mxu0 %v4018_v56  ;;  %1922 = vmatpush1.bf16.msra.mxu1 %v4021_v57  ;;  %v4108_v56 = vld [vmem:[#allocation5 + $0x500] ss:$16 sps:$4 sm:$0xff]   ;;  %v4111_v57 = vld [vmem:[#allocation5 + $0x508] ss:$16 sps:$4 sm:$0xff]  }
  0xb1   :  { %1759 = vmatprep.subr.bf16.mxu0 %v4026_v58  ;;  %1923 = vmatprep.subr.bf16.mxu1 %v4029_v59  ;;  %v4116_v58 = vld [vmem:[#allocation5 + $0x524] ss:$16 sps:$4 sm:$0xff]   ;;  %v4119_v59 = vld [vmem:[#allocation5 + $0x52c] ss:$16 sps:$4 sm:$0xff]  }
  0xb4   :  { %1760 = vmatpush1.bf16.msra.mxu0 %v4024_v60  ;;  %1924 = vmatpush1.bf16.msra.mxu1 %v4027_v61  ;;  %v4114_v60 = vld [vmem:[#allocation5 + $0x520] ss:$16 sps:$4 sm:$0xff]   ;;  %v4117_v61 = vld [vmem:[#allocation5 + $0x528] ss:$16 sps:$4 sm:$0xff]  }
  0xb5   :  { %1761 = vmatprep.subr.bf16.mxu0 %v4032_v62  ;;  %1925 = vmatprep.subr.bf16.mxu1 %v4035_v63  ;;  %v4122_v62 = vld [vmem:[#allocation5 + $0x544] ss:$16 sps:$4 sm:$0xff]   ;;  %v4125_v63 = vld [vmem:[#allocation5 + $0x54c] ss:$16 sps:$4 sm:$0xff]  }
  0xb8   :  { %1762 = vmatpush1.bf16.msra.mxu0 %v4030_v0  ;;  %1926 = vmatpush1.bf16.msra.mxu1 %v4033_v1  ;;  %v4120_v0 = vld [vmem:[#allocation5 + $0x540] ss:$16 sps:$4 sm:$0xff]   ;;  %v4123_v1 = vld [vmem:[#allocation5 + $0x548] ss:$16 sps:$4 sm:$0xff]  }
  0xb9   :  { %1763 = vmatprep.subr.bf16.mxu0 %v4038_v2  ;;  %1927 = vmatprep.subr.bf16.mxu1 %v4041_v3  ;;  %v4128_v2 = vld [vmem:[#allocation5 + $0x564] ss:$16 sps:$4 sm:$0xff]   ;;  %v4131_v3 = vld [vmem:[#allocation5 + $0x56c] ss:$16 sps:$4 sm:$0xff]  }
  0xbc   :  { %1764 = vmatpush1.bf16.msra.mxu0 %v4036_v4  ;;  %1928 = vmatpush1.bf16.msra.mxu1 %v4039_v5  ;;  %v4126_v4 = vld [vmem:[#allocation5 + $0x560] ss:$16 sps:$4 sm:$0xff]   ;;  %v4129_v5 = vld [vmem:[#allocation5 + $0x568] ss:$16 sps:$4 sm:$0xff]  }
  0xbd   :  { %1765 = vmatprep.subr.bf16.mxu0 %v4044_v6  ;;  %1929 = vmatprep.subr.bf16.mxu1 %v4047_v7  ;;  %v4134_v6 = vld [vmem:[#allocation5 + $0x584] ss:$16 sps:$4 sm:$0xff]   ;;  %v4137_v7 = vld [vmem:[#allocation5 + $0x58c] ss:$16 sps:$4 sm:$0xff]  }
  0xc0   :  { %1766 = vmatpush1.bf16.msra.mxu0 %v4042_v8  ;;  %1930 = vmatpush1.bf16.msra.mxu1 %v4045_v9  ;;  %v4132_v8 = vld [vmem:[#allocation5 + $0x580] ss:$16 sps:$4 sm:$0xff]   ;;  %v4135_v9 = vld [vmem:[#allocation5 + $0x588] ss:$16 sps:$4 sm:$0xff]  }
  0xc1   :  { %1767 = vmatprep.subr.bf16.mxu0 %v4050_v10  ;;  %1931 = vmatprep.subr.bf16.mxu1 %v4053_v11  ;;  %v4140_v10 = vld [vmem:[#allocation5 + $0x5a4] ss:$16 sps:$4 sm:$0xff]   ;;  %v4143_v11 = vld [vmem:[#allocation5 + $0x5ac] ss:$16 sps:$4 sm:$0xff]  }
  0xc4   :  { %1768 = vmatpush1.bf16.msra.mxu0 %v4048_v12  ;;  %1932 = vmatpush1.bf16.msra.mxu1 %v4051_v13  ;;  %v4138_v12 = vld [vmem:[#allocation5 + $0x5a0] ss:$16 sps:$4 sm:$0xff]   ;;  %v4141_v13 = vld [vmem:[#allocation5 + $0x5a8] ss:$16 sps:$4 sm:$0xff]  }
  0xc5   :  { %1769 = vmatprep.subr.bf16.mxu0 %v4056_v14  ;;  %1933 = vmatprep.subr.bf16.mxu1 %v4059_v16  ;;  %v4146_v14 = vld [vmem:[#allocation5 + $0x5c4] ss:$16 sps:$4 sm:$0xff]   ;;  %v4149_v16 = vld [vmem:[#allocation5 + $0x5cc] ss:$16 sps:$4 sm:$0xff]  }
  0xc8   :  { %1770 = vmatpush1.bf16.msra.mxu0 %v4054_v17  ;;  %1934 = vmatpush1.bf16.msra.mxu1 %v4057_v18  ;;  %v4144_v17 = vld [vmem:[#allocation5 + $0x5c0] ss:$16 sps:$4 sm:$0xff]   ;;  %v4147_v18 = vld [vmem:[#allocation5 + $0x5c8] ss:$16 sps:$4 sm:$0xff]  }
  0xc9   :  { %1780 = vmatprep.subr.bf16.mxu0 %v4062_v19  ;;  %1944 = vmatprep.subr.bf16.mxu1 %v4065_v22  ;;  %v4152_v19 = vld [vmem:[#allocation5 + $0x5e4] ss:$16 sps:$4 sm:$0xff]   ;;  %v4155_v22 = vld [vmem:[#allocation5 + $0x5ec] ss:$16 sps:$4 sm:$0xff]  }
  0xcb   :  { %1772 = vmatmul.mubr.bf16.vlgmr.msra.gmra.mrb[0].mxu0 %v406_v24  ;;  %1936 = vmatmul.mubr.bf16.vlgmr.msra.gmra.mrb[0].mxu1 %v406_v24  ;;  %v4153_v24 = vld [vmem:[#allocation5 + $0x5e8] ss:$16 sps:$4 sm:$0xff]  }
  0xcc   :  { %1781 = vmatpush1.bf16.msra.mxu0 %v4060_v23  ;;  %1945 = vmatpush1.bf16.msra.mxu1 %v4063_v25  ;;  %v4150_v23 = vld [vmem:[#allocation5 + $0x5e0] ss:$16 sps:$4 sm:$0xff]   ;;  %v4159_v25 = vld [vmem:[#allocation5 + $0x604] ss:$16 sps:$4 sm:$0xff]  }
  0xcd   :  { %1782 = vmatprep.subr.bf16.mxu0 %v4068_v26  ;;  %1946 = vmatprep.subr.bf16.mxu1 %v4071_v27  ;;  %v4162_v26 = vld [vmem:[#allocation5 + $0x60c] ss:$16 sps:$4 sm:$0xff]   ;;  %v4157_v27 = vld [vmem:[#allocation5 + $0x600] ss:$16 sps:$4 sm:$0xff]  }
  0xce   :  { %1812 = vmatprep.mubr.bf16.mxu0 %v4711_v20  ;;  %1976 = vmatprep.mubr.bf16.mxu1 %v4711_v20 }
  0xd0   :  { %1783 = vmatpush1.bf16.msra.mxu0 %v4066_v28  ;;  %1947 = vmatpush1.bf16.msra.mxu1 %v4069_v29  ;;  %v4160_v28 = vld [vmem:[#allocation5 + $0x608] ss:$16 sps:$4 sm:$0xff]   ;;  %v4165_v29 = vld [vmem:[#allocation5 + $0x624] ss:$16 sps:$4 sm:$0xff]  }
  0xd1   :  { %1784 = vmatprep.subr.bf16.mxu0 %v4074_v30  ;;  %1948 = vmatprep.subr.bf16.mxu1 %v4077_v31  ;;  %v4168_v30 = vld [vmem:[#allocation5 + $0x62c] ss:$16 sps:$4 sm:$0xff]   ;;  %v409_v31 = vcombine.high %v4711_v20, %v4711_v20  ;;  %v4177_v20 = vld [vmem:[#allocation5 + $0x664] ss:$16 sps:$4 sm:$0xff]  }
  0xd4   :  { %1785 = vmatpush1.bf16.msra.mxu0 %v4072_v15  ;;  %1949 = vmatpush1.bf16.msra.mxu1 %v4075_v32  ;;  %v4163_v15 = vld [vmem:[#allocation5 + $0x620] ss:$16 sps:$4 sm:$0xff]   ;;  %v4166_v32 = vld [vmem:[#allocation5 + $0x628] ss:$16 sps:$4 sm:$0xff]  }
  0xd5   :  { %1786 = vmatprep.subr.bf16.mxu0 %v4080_v33  ;;  %1950 = vmatprep.subr.bf16.mxu1 %v4083_v34  ;;  %v4171_v33 = vld [vmem:[#allocation5 + $0x644] ss:$16 sps:$4 sm:$0xff]   ;;  %v4174_v34 = vld [vmem:[#allocation5 + $0x64c] ss:$16 sps:$4 sm:$0xff]  }
  0xd8   :  { %1787 = vmatpush1.bf16.msra.mxu0 %v4078_v35  ;;  %1951 = vmatpush1.bf16.msra.mxu1 %v4081_v36  ;;  %v4169_v35 = vld [vmem:[#allocation5 + $0x640] ss:$16 sps:$4 sm:$0xff]   ;;  %v4172_v36 = vld [vmem:[#allocation5 + $0x648] ss:$16 sps:$4 sm:$0xff]  }
  0xd9   :  { %1788 = vmatprep.subr.bf16.mxu0 %v4086_v37  ;;  %1952 = vmatprep.subr.bf16.mxu1 %v4089_v38  ;;  %v4180_v37 = vld [vmem:[#allocation5 + $0x66c] ss:$16 sps:$4 sm:$0xff]   ;;  %v4175_v38 = vld [vmem:[#allocation5 + $0x660] ss:$16 sps:$4 sm:$0xff]  }
  0xdc   :  { %1789 = vmatpush1.bf16.msra.mxu0 %v4084_v39  ;;  %1953 = vmatpush1.bf16.msra.mxu1 %v4087_v40  ;;  %v4178_v39 = vld [vmem:[#allocation5 + $0x668] ss:$16 sps:$4 sm:$0xff]   ;;  %v4183_v40 = vld [vmem:[#allocation5 + $0x684] ss:$16 sps:$4 sm:$0xff]  }
  0xdd   :  { %1790 = vmatprep.subr.bf16.mxu0 %v4092_v41  ;;  %1954 = vmatprep.subr.bf16.mxu1 %v4095_v43  ;;  %v4186_v41 = vld [vmem:[#allocation5 + $0x68c] ss:$16 sps:$4 sm:$0xff]   ;;  %v4181_v43 = vld [vmem:[#allocation5 + $0x680] ss:$16 sps:$4 sm:$0xff]  }
  0xe0   :  { %1791 = vmatpush1.bf16.msra.mxu0 %v4090_v44  ;;  %1955 = vmatpush1.bf16.msra.mxu1 %v4093_v45  ;;  %v4184_v44 = vld [vmem:[#allocation5 + $0x688] ss:$16 sps:$4 sm:$0xff]   ;;  %v4189_v45 = vld [vmem:[#allocation5 + $0x6a4] ss:$16 sps:$4 sm:$0xff]  }
  0xe1   :  { %1792 = vmatprep.subr.bf16.mxu0 %v4098_v46  ;;  %1956 = vmatprep.subr.bf16.mxu1 %v4101_v47  ;;  %v4192_v46 = vld [vmem:[#allocation5 + $0x6ac] ss:$16 sps:$4 sm:$0xff]   ;;  %v4187_v47 = vld [vmem:[#allocation5 + $0x6a0] ss:$16 sps:$4 sm:$0xff]  }
  0xe4   :  { %1793 = vmatpush1.bf16.msra.mxu0 %v4096_v48  ;;  %1957 = vmatpush1.bf16.msra.mxu1 %v4099_v49  ;;  %v4190_v48 = vld [vmem:[#allocation5 + $0x6a8] ss:$16 sps:$4 sm:$0xff]   ;;  %v4195_v49 = vld [vmem:[#allocation5 + $0x6c4] ss:$16 sps:$4 sm:$0xff]  }
  0xe5   :  { %1794 = vmatprep.subr.bf16.mxu0 %v4104_v50  ;;  %1958 = vmatprep.subr.bf16.mxu1 %v4107_v51  ;;  %v4198_v50 = vld [vmem:[#allocation5 + $0x6cc] ss:$16 sps:$4 sm:$0xff]   ;;  %v4193_v51 = vld [vmem:[#allocation5 + $0x6c0] ss:$16 sps:$4 sm:$0xff]  }
  0xe8   :  { %1795 = vmatpush1.bf16.msra.mxu0 %v4102_v52  ;;  %1959 = vmatpush1.bf16.msra.mxu1 %v4105_v53  ;;  %v4196_v52 = vld [vmem:[#allocation5 + $0x6c8] ss:$16 sps:$4 sm:$0xff]   ;;  %v4201_v53 = vld [vmem:[#allocation5 + $0x6e4] ss:$16 sps:$4 sm:$0xff]  }
  0xe9   :  { %1796 = vmatprep.subr.bf16.mxu0 %v4110_v54  ;;  %1960 = vmatprep.subr.bf16.mxu1 %v4113_v55  ;;  %v4204_v54 = vld [vmem:[#allocation5 + $0x6ec] ss:$16 sps:$4 sm:$0xff]   ;;  %v4199_v55 = vld [vmem:[#allocation5 + $0x6e0] ss:$16 sps:$4 sm:$0xff]  }
  0xec   :  { %1797 = vmatpush1.bf16.msra.mxu0 %v4108_v56  ;;  %1961 = vmatpush1.bf16.msra.mxu1 %v4111_v57  ;;  %v4202_v56 = vld [vmem:[#allocation5 + $0x6e8] ss:$16 sps:$4 sm:$0xff]   ;;  %v4207_v57 = vld [vmem:[#allocation5 + $0x704] ss:$16 sps:$4 sm:$0xff]  }
  0xed   :  { %1798 = vmatprep.subr.bf16.mxu0 %v4116_v58  ;;  %1962 = vmatprep.subr.bf16.mxu1 %v4119_v59  ;;  %v4210_v58 = vld [vmem:[#allocation5 + $0x70c] ss:$16 sps:$4 sm:$0xff]   ;;  %v4205_v59 = vld [vmem:[#allocation5 + $0x700] ss:$16 sps:$4 sm:$0xff]  }
  0xf0   :  { %1799 = vmatpush1.bf16.msra.mxu0 %v4114_v60  ;;  %1963 = vmatpush1.bf16.msra.mxu1 %v4117_v61  ;;  %v4208_v60 = vld [vmem:[#allocation5 + $0x708] ss:$16 sps:$4 sm:$0xff]   ;;  %v4213_v61 = vld [vmem:[#allocation5 + $0x724] ss:$16 sps:$4 sm:$0xff]  }
  0xf1   :  { %1800 = vmatprep.subr.bf16.mxu0 %v4122_v62  ;;  %1964 = vmatprep.subr.bf16.mxu1 %v4125_v63  ;;  %v4216_v62 = vld [vmem:[#allocation5 + $0x72c] ss:$16 sps:$4 sm:$0xff]   ;;  %v4211_v63 = vld [vmem:[#allocation5 + $0x720] ss:$16 sps:$4 sm:$0xff]  }
  0xf4   :  { %1801 = vmatpush1.bf16.msra.mxu0 %v4120_v0  ;;  %1965 = vmatpush1.bf16.msra.mxu1 %v4123_v1  ;;  %v4214_v0 = vld [vmem:[#allocation5 + $0x728] ss:$16 sps:$4 sm:$0xff]   ;;  %v4219_v1 = vld [vmem:[#allocation5 + $0x744] ss:$16 sps:$4 sm:$0xff]  }
  0xf5   :  { %1802 = vmatprep.subr.bf16.mxu0 %v4128_v2  ;;  %1966 = vmatprep.subr.bf16.mxu1 %v4131_v3  ;;  %v4222_v2 = vld [vmem:[#allocation5 + $0x74c] ss:$16 sps:$4 sm:$0xff]   ;;  %v4217_v3 = vld [vmem:[#allocation5 + $0x740] ss:$16 sps:$4 sm:$0xff]  }
  0xf8   :  { %1803 = vmatpush1.bf16.msra.mxu0 %v4126_v4  ;;  %1967 = vmatpush1.bf16.msra.mxu1 %v4129_v5  ;;  %v4220_v4 = vld [vmem:[#allocation5 + $0x748] ss:$16 sps:$4 sm:$0xff]   ;;  %v4225_v5 = vld [vmem:[#allocation5 + $0x764] ss:$16 sps:$4 sm:$0xff]  }
  0xf9   :  { %1804 = vmatprep.subr.bf16.mxu0 %v4134_v6  ;;  %1968 = vmatprep.subr.bf16.mxu1 %v4137_v7  ;;  %v4228_v6 = vld [vmem:[#allocation5 + $0x76c] ss:$16 sps:$4 sm:$0xff]   ;;  %v4223_v7 = vld [vmem:[#allocation5 + $0x760] ss:$16 sps:$4 sm:$0xff]  }
  0xfc   :  { %1805 = vmatpush1.bf16.msra.mxu0 %v4132_v8  ;;  %1969 = vmatpush1.bf16.msra.mxu1 %v4135_v9  ;;  %v4226_v8 = vld [vmem:[#allocation5 + $0x768] ss:$16 sps:$4 sm:$0xff]   ;;  %v4231_v9 = vld [vmem:[#allocation5 + $0x784] ss:$16 sps:$4 sm:$0xff]  }
  0xfd   :  { %1806 = vmatprep.subr.bf16.mxu0 %v4140_v10  ;;  %1970 = vmatprep.subr.bf16.mxu1 %v4143_v11  ;;  %v4234_v10 = vld [vmem:[#allocation5 + $0x78c] ss:$16 sps:$4 sm:$0xff]   ;;  %v4229_v11 = vld [vmem:[#allocation5 + $0x780] ss:$16 sps:$4 sm:$0xff]  }
 0x100   :  { %1807 = vmatpush1.bf16.msra.mxu0 %v4138_v12  ;;  %1971 = vmatpush1.bf16.msra.mxu1 %v4141_v13  ;;  %v4232_v12 = vld [vmem:[#allocation5 + $0x788] ss:$16 sps:$4 sm:$0xff]   ;;  %v4237_v13 = vld [vmem:[#allocation5 + $0x7a4] ss:$16 sps:$4 sm:$0xff]  }
 0x101   :  { %1808 = vmatprep.subr.bf16.mxu0 %v4146_v14  ;;  %1972 = vmatprep.subr.bf16.mxu1 %v4149_v16  ;;  %v4240_v14 = vld [vmem:[#allocation5 + $0x7ac] ss:$16 sps:$4 sm:$0xff]   ;;  %v4235_v16 = vld [vmem:[#allocation5 + $0x7a0] ss:$16 sps:$4 sm:$0xff]  }
 0x104   :  { %1809 = vmatpush1.bf16.msra.mxu0 %v4144_v17  ;;  %1973 = vmatpush1.bf16.msra.mxu1 %v4147_v18  ;;  %v4238_v17 = vld [vmem:[#allocation5 + $0x7a8] ss:$16 sps:$4 sm:$0xff]   ;;  %v4243_v18 = vld [vmem:[#allocation5 + $0x7c4] ss:$16 sps:$4 sm:$0xff]  }
 0x105   :  { %1810 = vmatprep.subr.bf16.mxu0 %v4152_v19  ;;  %1974 = vmatprep.subr.bf16.mxu1 %v4155_v22  ;;  %v4246_v19 = vld [vmem:[#allocation5 + $0x7cc] ss:$16 sps:$4 sm:$0xff]   ;;  %v4241_v22 = vld [vmem:[#allocation5 + $0x7c0] ss:$16 sps:$4 sm:$0xff]  }
 0x108   :  { %1811 = vmatpush1.bf16.msra.mxu0 %v4150_v23  ;;  %1975 = vmatpush1.bf16.msra.mxu1 %v4153_v24  ;;  %v4244_v23 = vld [vmem:[#allocation5 + $0x7c8] ss:$16 sps:$4 sm:$0xff]   ;;  %v4249_v24 = vld [vmem:[#allocation5 + $0x7e4] ss:$16 sps:$4 sm:$0xff]  }
 0x109   :  { %1821 = vmatprep.subr.bf16.mxu0 %v4159_v25  ;;  %1985 = vmatprep.subr.bf16.mxu1 %v4162_v26  ;;  %v4252_v25 = vld [vmem:[#allocation5 + $0x7ec] ss:$16 sps:$4 sm:$0xff]   ;;  %v4247_v26 = vld [vmem:[#allocation5 + $0x7e0] ss:$16 sps:$4 sm:$0xff]  }
 0x10b   :  { %1813 = vmatmul.mubr.bf16.vlgmr.msra.gmra.mrb[0].mxu0 %v4714_v21  ;;  %1977 = vmatmul.mubr.bf16.vlgmr.msra.gmra.mrb[0].mxu1 %v4714_v21 }
 0x10c   :  { %1822 = vmatpush1.bf16.msra.mxu0 %v4157_v27  ;;  %1986 = vmatpush1.bf16.msra.mxu1 %v4160_v28  ;;  %v4250_v27 = vld [vmem:[#allocation5 + $0x7e8] ss:$16 sps:$4 sm:$0xff]   ;;  %v4255_v28 = vld [vmem:[#allocation7 + $0x4] ss:$16 sps:$4 sm:$0xff]  }
 0x10d   :  { %1823 = vmatprep.subr.bf16.mxu0 %v4165_v29  ;;  %1987 = vmatprep.subr.bf16.mxu1 %v4168_v30  ;;  %v4258_v29 = vld [vmem:[#allocation7 + $0xc] ss:$16 sps:$4 sm:$0xff]   ;;  %v407_v30 = vcombine.high %v4714_v21, %v4714_v21  ;;  %v4265_v21 = vld [vmem:[#allocation7 + $0x40] ss:$16 sps:$4 sm:$0xff]  }
 0x10e   :  { %1853 = vmatprep.mubr.bf16.mxu0 %v409_v31  ;;  %2017 = vmatprep.mubr.bf16.mxu1 %v409_v31  ;;  %v4253_v31 = vld [vmem:[#allocation7] ss:$16 sps:$4 sm:$0xff]  }
 0x110   :  { %1824 = vmatpush1.bf16.msra.mxu0 %v4163_v15  ;;  %1988 = vmatpush1.bf16.msra.mxu1 %v4166_v32  ;;  %v4256_v15 = vld [vmem:[#allocation7 + $0x8] ss:$16 sps:$4 sm:$0xff]   ;;  %v4261_v32 = vld [vmem:[#allocation7 + $0x24] ss:$16 sps:$4 sm:$0xff]  }
 0x111   :  { %1825 = vmatprep.subr.bf16.mxu0 %v4171_v33  ;;  %1989 = vmatprep.subr.bf16.mxu1 %v4174_v34  ;;  %v4264_v33 = vld [vmem:[#allocation7 + $0x2c] ss:$16 sps:$4 sm:$0xff]   ;;  %v4259_v34 = vld [vmem:[#allocation7 + $0x20] ss:$16 sps:$4 sm:$0xff]  }
 0x114   :  { %1826 = vmatpush1.bf16.msra.mxu0 %v4169_v35  ;;  %1990 = vmatpush1.bf16.msra.mxu1 %v4172_v36  ;;  %v4262_v35 = vld [vmem:[#allocation7 + $0x28] ss:$16 sps:$4 sm:$0xff]   ;;  %v4267_v36 = vld [vmem:[#allocation7 + $0x44] ss:$16 sps:$4 sm:$0xff]  }
 0x115   :  { %1827 = vmatprep.subr.bf16.mxu0 %v4177_v20  ;;  %1991 = vmatprep.subr.bf16.mxu1 %v4180_v37  ;;  %v4270_v20 = vld [vmem:[#allocation7 + $0x4c] ss:$16 sps:$4 sm:$0xff]   ;;  %v4268_v37 = vld [vmem:[#allocation7 + $0x48] ss:$16 sps:$4 sm:$0xff]  }
 0x118   :  { %1828 = vmatpush1.bf16.msra.mxu0 %v4175_v38  ;;  %1992 = vmatpush1.bf16.msra.mxu1 %v4178_v39  ;;  %v4273_v38 = vld [vmem:[#allocation7 + $0x64] ss:$16 sps:$4 sm:$0xff]   ;;  %v4276_v39 = vld [vmem:[#allocation7 + $0x6c] ss:$16 sps:$4 sm:$0xff]  }
 0x119   :  { %1829 = vmatprep.subr.bf16.mxu0 %v4183_v40  ;;  %1993 = vmatprep.subr.bf16.mxu1 %v4186_v41  ;;  %v4271_v40 = vld [vmem:[#allocation7 + $0x60] ss:$16 sps:$4 sm:$0xff]   ;;  %v4274_v41 = vld [vmem:[#allocation7 + $0x68] ss:$16 sps:$4 sm:$0xff]  }
 0x11c   :  { %1830 = vmatpush1.bf16.msra.mxu0 %v4181_v43  ;;  %1994 = vmatpush1.bf16.msra.mxu1 %v4184_v44  ;;  %v4279_v43 = vld [vmem:[#allocation7 + $0x84] ss:$16 sps:$4 sm:$0xff]   ;;  %v4282_v44 = vld [vmem:[#allocation7 + $0x8c] ss:$16 sps:$4 sm:$0xff]  }
 0x11d   :  { %1831 = vmatprep.subr.bf16.mxu0 %v4189_v45  ;;  %1995 = vmatprep.subr.bf16.mxu1 %v4192_v46  ;;  %v4277_v45 = vld [vmem:[#allocation7 + $0x80] ss:$16 sps:$4 sm:$0xff]   ;;  %v4280_v46 = vld [vmem:[#allocation7 + $0x88] ss:$16 sps:$4 sm:$0xff]  }
 0x120   :  { %1832 = vmatpush1.bf16.msra.mxu0 %v4187_v47  ;;  %1996 = vmatpush1.bf16.msra.mxu1 %v4190_v48  ;;  %v4285_v47 = vld [vmem:[#allocation7 + $0xa4] ss:$16 sps:$4 sm:$0xff]   ;;  %v4288_v48 = vld [vmem:[#allocation7 + $0xac] ss:$16 sps:$4 sm:$0xff]  }
 0x121   :  { %1833 = vmatprep.subr.bf16.mxu0 %v4195_v49  ;;  %1997 = vmatprep.subr.bf16.mxu1 %v4198_v50  ;;  %v4283_v49 = vld [vmem:[#allocation7 + $0xa0] ss:$16 sps:$4 sm:$0xff]   ;;  %v4286_v50 = vld [vmem:[#allocation7 + $0xa8] ss:$16 sps:$4 sm:$0xff]  }
 0x124   :  { %1834 = vmatpush1.bf16.msra.mxu0 %v4193_v51  ;;  %1998 = vmatpush1.bf16.msra.mxu1 %v4196_v52  ;;  %v4291_v51 = vld [vmem:[#allocation7 + $0xc4] ss:$16 sps:$4 sm:$0xff]   ;;  %v4294_v52 = vld [vmem:[#allocation7 + $0xcc] ss:$16 sps:$4 sm:$0xff]  }
 0x125   :  { %1835 = vmatprep.subr.bf16.mxu0 %v4201_v53  ;;  %1999 = vmatprep.subr.bf16.mxu1 %v4204_v54  ;;  %v4289_v53 = vld [vmem:[#allocation7 + $0xc0] ss:$16 sps:$4 sm:$0xff]   ;;  %v4292_v54 = vld [vmem:[#allocation7 + $0xc8] ss:$16 sps:$4 sm:$0xff]  }
 0x128   :  { %1836 = vmatpush1.bf16.msra.mxu0 %v4199_v55  ;;  %2000 = vmatpush1.bf16.msra.mxu1 %v4202_v56  ;;  %v4297_v55 = vld [vmem:[#allocation7 + $0xe4] ss:$16 sps:$4 sm:$0xff]   ;;  %v4300_v56 = vld [vmem:[#allocation7 + $0xec] ss:$16 sps:$4 sm:$0xff]  }
 0x129   :  { %1837 = vmatprep.subr.bf16.mxu0 %v4207_v57  ;;  %2001 = vmatprep.subr.bf16.mxu1 %v4210_v58  ;;  %v4295_v57 = vld [vmem:[#allocation7 + $0xe0] ss:$16 sps:$4 sm:$0xff]   ;;  %v4298_v58 = vld [vmem:[#allocation7 + $0xe8] ss:$16 sps:$4 sm:$0xff]  }
 0x12c   :  { %1838 = vmatpush1.bf16.msra.mxu0 %v4205_v59  ;;  %2002 = vmatpush1.bf16.msra.mxu1 %v4208_v60  ;;  %v4303_v59 = vld [vmem:[#allocation7 + $0x104] ss:$16 sps:$4 sm:$0xff]   ;;  %v4306_v60 = vld [vmem:[#allocation7 + $0x10c] ss:$16 sps:$4 sm:$0xff]  }
 0x12d   :  { %1839 = vmatprep.subr.bf16.mxu0 %v4213_v61  ;;  %2003 = vmatprep.subr.bf16.mxu1 %v4216_v62  ;;  %v4301_v61 = vld [vmem:[#allocation7 + $0x100] ss:$16 sps:$4 sm:$0xff]   ;;  %v4304_v62 = vld [vmem:[#allocation7 + $0x108] ss:$16 sps:$4 sm:$0xff]  }
 0x130   :  { %1840 = vmatpush1.bf16.msra.mxu0 %v4211_v63  ;;  %2004 = vmatpush1.bf16.msra.mxu1 %v4214_v0  ;;  %v4309_v63 = vld [vmem:[#allocation7 + $0x124] ss:$16 sps:$4 sm:$0xff]   ;;  %v4312_v0 = vld [vmem:[#allocation7 + $0x12c] ss:$16 sps:$4 sm:$0xff]  }
 0x131   :  { %1841 = vmatprep.subr.bf16.mxu0 %v4219_v1  ;;  %2005 = vmatprep.subr.bf16.mxu1 %v4222_v2  ;;  %v4307_v1 = vld [vmem:[#allocation7 + $0x120] ss:$16 sps:$4 sm:$0xff]   ;;  %v4310_v2 = vld [vmem:[#allocation7 + $0x128] ss:$16 sps:$4 sm:$0xff]  }
 0x134   :  { %1842 = vmatpush1.bf16.msra.mxu0 %v4217_v3  ;;  %2006 = vmatpush1.bf16.msra.mxu1 %v4220_v4  ;;  %v4315_v3 = vld [vmem:[#allocation7 + $0x144] ss:$16 sps:$4 sm:$0xff]   ;;  %v4318_v4 = vld [vmem:[#allocation7 + $0x14c] ss:$16 sps:$4 sm:$0xff]  }
 0x135   :  { %1843 = vmatprep.subr.bf16.mxu0 %v4225_v5  ;;  %2007 = vmatprep.subr.bf16.mxu1 %v4228_v6  ;;  %v4313_v5 = vld [vmem:[#allocation7 + $0x140] ss:$16 sps:$4 sm:$0xff]   ;;  %v4316_v6 = vld [vmem:[#allocation7 + $0x148] ss:$16 sps:$4 sm:$0xff]  }
 0x138   :  { %1844 = vmatpush1.bf16.msra.mxu0 %v4223_v7  ;;  %2008 = vmatpush1.bf16.msra.mxu1 %v4226_v8  ;;  %v4321_v7 = vld [vmem:[#allocation7 + $0x164] ss:$16 sps:$4 sm:$0xff]   ;;  %v4324_v8 = vld [vmem:[#allocation7 + $0x16c] ss:$16 sps:$4 sm:$0xff]  }
 0x139   :  { %1845 = vmatprep.subr.bf16.mxu0 %v4231_v9  ;;  %2009 = vmatprep.subr.bf16.mxu1 %v4234_v10  ;;  %v4319_v9 = vld [vmem:[#allocation7 + $0x160] ss:$16 sps:$4 sm:$0xff]   ;;  %v4322_v10 = vld [vmem:[#allocation7 + $0x168] ss:$16 sps:$4 sm:$0xff]  }
 0x13c   :  { %1846 = vmatpush1.bf16.msra.mxu0 %v4229_v11  ;;  %2010 = vmatpush1.bf16.msra.mxu1 %v4232_v12  ;;  %v4327_v11 = vld [vmem:[#allocation7 + $0x184] ss:$16 sps:$4 sm:$0xff]   ;;  %v4330_v12 = vld [vmem:[#allocation7 + $0x18c] ss:$16 sps:$4 sm:$0xff]  }
 0x13d   :  { %1847 = vmatprep.subr.bf16.mxu0 %v4237_v13  ;;  %2011 = vmatprep.subr.bf16.mxu1 %v4240_v14  ;;  %v4325_v13 = vld [vmem:[#allocation7 + $0x180] ss:$16 sps:$4 sm:$0xff]   ;;  %v4328_v14 = vld [vmem:[#allocation7 + $0x188] ss:$16 sps:$4 sm:$0xff]  }
 0x140   :  { %1848 = vmatpush1.bf16.msra.mxu0 %v4235_v16  ;;  %2012 = vmatpush1.bf16.msra.mxu1 %v4238_v17  ;;  %v4333_v16 = vld [vmem:[#allocation7 + $0x1a4] ss:$16 sps:$4 sm:$0xff]   ;;  %v4336_v17 = vld [vmem:[#allocation7 + $0x1ac] ss:$16 sps:$4 sm:$0xff]  }
 0x141   :  { %1849 = vmatprep.subr.bf16.mxu0 %v4243_v18  ;;  %2013 = vmatprep.subr.bf16.mxu1 %v4246_v19  ;;  %v4331_v18 = vld [vmem:[#allocation7 + $0x1a0] ss:$16 sps:$4 sm:$0xff]   ;;  %v4334_v19 = vld [vmem:[#allocation7 + $0x1a8] ss:$16 sps:$4 sm:$0xff]  }
 0x144   :  { %1850 = vmatpush1.bf16.msra.mxu0 %v4241_v22  ;;  %2014 = vmatpush1.bf16.msra.mxu1 %v4244_v23  ;;  %v4339_v22 = vld [vmem:[#allocation7 + $0x1c4] ss:$16 sps:$4 sm:$0xff]   ;;  %v4342_v23 = vld [vmem:[#allocation7 + $0x1cc] ss:$16 sps:$4 sm:$0xff]  }
 0x145   :  { %1851 = vmatprep.subr.bf16.mxu0 %v4249_v24  ;;  %2015 = vmatprep.subr.bf16.mxu1 %v4252_v25  ;;  %v4337_v24 = vld [vmem:[#allocation7 + $0x1c0] ss:$16 sps:$4 sm:$0xff]   ;;  %v4340_v25 = vld [vmem:[#allocation7 + $0x1c8] ss:$16 sps:$4 sm:$0xff]  }
 0x148   :  { %1852 = vmatpush1.bf16.msra.mxu0 %v4247_v26  ;;  %2016 = vmatpush1.bf16.msra.mxu1 %v4250_v27  ;;  %v4345_v26 = vld [vmem:[#allocation7 + $0x1e4] ss:$16 sps:$4 sm:$0xff]   ;;  %v4348_v27 = vld [vmem:[#allocation7 + $0x1ec] ss:$16 sps:$4 sm:$0xff]  }
 0x149   :  { %2824 = vmatprep.subr.bf16.mxu0 %v4255_v28  ;;  %2906 = vmatprep.subr.bf16.mxu1 %v4258_v29  ;;  %v4343_v28 = vld [vmem:[#allocation7 + $0x1e0] ss:$16 sps:$4 sm:$0xff]   ;;  %v4346_v29 = vld [vmem:[#allocation7 + $0x1e8] ss:$16 sps:$4 sm:$0xff]  }
 0x14b   :  { %1854 = vmatmul.mubr.bf16.vlgmr.msra.gmra.mrb[0].mxu0 %v407_v30  ;;  %2018 = vmatmul.mubr.bf16.vlgmr.msra.gmra.mrb[0].mxu1 %v407_v30  ;;  %v4351_v30 = vld [vmem:[#allocation7 + $0x204] ss:$16 sps:$4 sm:$0xff]  }
 0x14c   :  { %2825 = vmatpush1.bf16.msra.mxu0 %v4253_v31  ;;  %2907 = vmatpush1.bf16.msra.mxu1 %v4256_v15  ;;  %v4354_v31 = vld [vmem:[#allocation7 + $0x20c] ss:$16 sps:$4 sm:$0xff]   ;;  %v342_v15 = vsub.s32 0, %v4699_v42 }
 0x14d   :  { %2826 = vmatprep.subr.bf16.mxu0 %v4261_v32  ;;  %2908 = vmatprep.subr.bf16.mxu1 %v4264_v33  ;;  %v4732_v32 = vld [vmem:[%s4780_s2] sm:$0xf]  ;;  %v346_v33 = vsub.s32 1, %v4699_v42 }
 0x150   :  { %2827 = vmatpush1.bf16.msra.mxu0 %v4259_v34  ;;  %2909 = vmatpush1.bf16.msra.mxu1 %v4262_v35  ;;  %v354_v34 = vsub.s32 3, %v4699_v42  ;;  %v343_v35 = vrot.slane %v4732_v32, %v342_v15 }
 0x151   :  { %2828 = vmatprep.subr.bf16.mxu0 %v4267_v36  ;;  %2910 = vmatprep.subr.bf16.mxu1 %v4270_v20  ;;  %v347_v36 = vrot.slane %v4732_v32, %v346_v33 }
 0x152   :  { %v355_v20 = vrot.slane %v4732_v32, %v354_v34 }
 0x154   :  { %2829 = vmatpush1.bf16.msra.mxu0 %v4265_v21  ;;  %2911 = vmatpush1.bf16.msra.mxu1 %v4268_v37 }
 0x155   :  { %2830 = vmatprep.subr.bf16.mxu0 %v4273_v38  ;;  %2912 = vmatprep.subr.bf16.mxu1 %v4276_v39 }
 0x158   :  { %2831 = vmatpush1.bf16.msra.mxu0 %v4271_v40  ;;  %2913 = vmatpush1.bf16.msra.mxu1 %v4274_v41 }
 0x159   :  { %2832 = vmatprep.subr.bf16.mxu0 %v4279_v43  ;;  %2914 = vmatprep.subr.bf16.mxu1 %v4282_v44 }
 0x15c   :  { %2833 = vmatpush1.bf16.msra.mxu0 %v4277_v45  ;;  %2915 = vmatpush1.bf16.msra.mxu1 %v4280_v46 }
 0x15d   :  { %2834 = vmatprep.subr.bf16.mxu0 %v4285_v47  ;;  %2916 = vmatprep.subr.bf16.mxu1 %v4288_v48 }
 0x160   :  { %2835 = vmatpush1.bf16.msra.mxu0 %v4283_v49  ;;  %2917 = vmatpush1.bf16.msra.mxu1 %v4286_v50 }
 0x161   :  { %2836 = vmatprep.subr.bf16.mxu0 %v4291_v51  ;;  %2918 = vmatprep.subr.bf16.mxu1 %v4294_v52  ;;  %v4349_v52 = vld [vmem:[#allocation7 + $0x200] ss:$16 sps:$4 sm:$0xff]  }
 0x164   :  { %2837 = vmatpush1.bf16.msra.mxu0 %v4289_v53  ;;  %2919 = vmatpush1.bf16.msra.mxu1 %v4292_v54  ;;  %v4352_v53 = vld [vmem:[#allocation7 + $0x208] ss:$16 sps:$4 sm:$0xff]  }
 0x165   :  { %2838 = vmatprep.subr.bf16.mxu0 %v4297_v55  ;;  %2920 = vmatprep.subr.bf16.mxu1 %v4300_v56  ;;  %v4357_v55 = vld [vmem:[#allocation7 + $0x224] ss:$16 sps:$4 sm:$0xff]   ;;  %v4360_v56 = vld [vmem:[#allocation7 + $0x22c] ss:$16 sps:$4 sm:$0xff]  }
 0x168   :  { %2839 = vmatpush1.bf16.msra.mxu0 %v4295_v57  ;;  %2921 = vmatpush1.bf16.msra.mxu1 %v4298_v58  ;;  %v4355_v58 = vld [vmem:[#allocation7 + $0x220] ss:$16 sps:$4 sm:$0xff]  }
 0x169   :  { %2840 = vmatprep.subr.bf16.mxu0 %v4303_v59  ;;  %2922 = vmatprep.subr.bf16.mxu1 %v4306_v60  ;;  %v4358_v59 = vld [vmem:[#allocation7 + $0x228] ss:$16 sps:$4 sm:$0xff]   ;;  %v4363_v60 = vld [vmem:[#allocation7 + $0x244] ss:$16 sps:$4 sm:$0xff]  }
 0x16c   :  { %2841 = vmatpush1.bf16.msra.mxu0 %v4301_v61  ;;  %2923 = vmatpush1.bf16.msra.mxu1 %v4304_v62  ;;  %v4366_v61 = vld [vmem:[#allocation7 + $0x24c] ss:$16 sps:$4 sm:$0xff]   ;;  %v4361_v62 = vld [vmem:[#allocation7 + $0x240] ss:$16 sps:$4 sm:$0xff]  }
 0x16d   :  { %2842 = vmatprep.subr.bf16.mxu0 %v4309_v63  ;;  %2924 = vmatprep.subr.bf16.mxu1 %v4312_v0  ;;  %v4364_v63 = vld [vmem:[#allocation7 + $0x248] ss:$16 sps:$4 sm:$0xff]   ;;  %v4369_v0 = vld [vmem:[#allocation7 + $0x264] ss:$16 sps:$4 sm:$0xff]  }
 0x170   :  { %2843 = vmatpush1.bf16.msra.mxu0 %v4307_v1  ;;  %2925 = vmatpush1.bf16.msra.mxu1 %v4310_v2  ;;  %v4372_v1 = vld [vmem:[#allocation7 + $0x26c] ss:$16 sps:$4 sm:$0xff]   ;;  %v4367_v2 = vld [vmem:[#allocation7 + $0x260] ss:$16 sps:$4 sm:$0xff]  }
 0x171   :  { %2844 = vmatprep.subr.bf16.mxu0 %v4315_v3  ;;  %2926 = vmatprep.subr.bf16.mxu1 %v4318_v4  ;;  %v4370_v3 = vld [vmem:[#allocation7 + $0x268] ss:$16 sps:$4 sm:$0xff]   ;;  %v4375_v4 = vld [vmem:[#allocation7 + $0x284] ss:$16 sps:$4 sm:$0xff]  }
 0x174   :  { %2845 = vmatpush1.bf16.msra.mxu0 %v4313_v5  ;;  %2927 = vmatpush1.bf16.msra.mxu1 %v4316_v6  ;;  %v4378_v5 = vld [vmem:[#allocation7 + $0x28c] ss:$16 sps:$4 sm:$0xff]   ;;  %v4373_v6 = vld [vmem:[#allocation7 + $0x280] ss:$16 sps:$4 sm:$0xff]  }
 0x175   :  { %2846 = vmatprep.subr.bf16.mxu0 %v4321_v7  ;;  %2928 = vmatprep.subr.bf16.mxu1 %v4324_v8  ;;  %v4376_v7 = vld [vmem:[#allocation7 + $0x288] ss:$16 sps:$4 sm:$0xff]   ;;  %v4381_v8 = vld [vmem:[#allocation7 + $0x2a4] ss:$16 sps:$4 sm:$0xff]  }
 0x178   :  { %2847 = vmatpush1.bf16.msra.mxu0 %v4319_v9  ;;  %2929 = vmatpush1.bf16.msra.mxu1 %v4322_v10  ;;  %v4384_v9 = vld [vmem:[#allocation7 + $0x2ac] ss:$16 sps:$4 sm:$0xff]   ;;  %v4379_v10 = vld [vmem:[#allocation7 + $0x2a0] ss:$16 sps:$4 sm:$0xff]  }
 0x179   :  { %2848 = vmatprep.subr.bf16.mxu0 %v4327_v11  ;;  %2930 = vmatprep.subr.bf16.mxu1 %v4330_v12  ;;  %v4382_v11 = vld [vmem:[#allocation7 + $0x2a8] ss:$16 sps:$4 sm:$0xff]   ;;  %v4387_v12 = vld [vmem:[#allocation7 + $0x2c4] ss:$16 sps:$4 sm:$0xff]  }
 0x17c   :  { %2849 = vmatpush1.bf16.msra.mxu0 %v4325_v13  ;;  %2931 = vmatpush1.bf16.msra.mxu1 %v4328_v14  ;;  %v4390_v13 = vld [vmem:[#allocation7 + $0x2cc] ss:$16 sps:$4 sm:$0xff]   ;;  %v4385_v14 = vld [vmem:[#allocation7 + $0x2c0] ss:$16 sps:$4 sm:$0xff]  }
 0x17d   :  { %2850 = vmatprep.subr.bf16.mxu0 %v4333_v16  ;;  %2932 = vmatprep.subr.bf16.mxu1 %v4336_v17  ;;  %v4388_v16 = vld [vmem:[#allocation7 + $0x2c8] ss:$16 sps:$4 sm:$0xff]   ;;  %v4393_v17 = vld [vmem:[#allocation7 + $0x2e4] ss:$16 sps:$4 sm:$0xff]  }
 0x180   :  { %2851 = vmatpush1.bf16.msra.mxu0 %v4331_v18  ;;  %2933 = vmatpush1.bf16.msra.mxu1 %v4334_v19  ;;  %v4396_v18 = vld [vmem:[#allocation7 + $0x2ec] ss:$16 sps:$4 sm:$0xff]   ;;  %v4391_v19 = vld [vmem:[#allocation7 + $0x2e0] ss:$16 sps:$4 sm:$0xff]  }
 0x181   :  { %2852 = vmatprep.subr.bf16.mxu0 %v4339_v22  ;;  %2934 = vmatprep.subr.bf16.mxu1 %v4342_v23  ;;  %v4394_v22 = vld [vmem:[#allocation7 + $0x2e8] ss:$16 sps:$4 sm:$0xff]   ;;  %v4399_v23 = vld [vmem:[#allocation7 + $0x304] ss:$16 sps:$4 sm:$0xff]  }
 0x184   :  { %2853 = vmatpush1.bf16.msra.mxu0 %v4337_v24  ;;  %2935 = vmatpush1.bf16.msra.mxu1 %v4340_v25  ;;  %v4402_v24 = vld [vmem:[#allocation7 + $0x30c] ss:$16 sps:$4 sm:$0xff]   ;;  %v4397_v25 = vld [vmem:[#allocation7 + $0x300] ss:$16 sps:$4 sm:$0xff]  }
 0x185   :  { %2854 = vmatprep.subr.bf16.mxu0 %v4345_v26  ;;  %2936 = vmatprep.subr.bf16.mxu1 %v4348_v27  ;;  %v4400_v26 = vld [vmem:[#allocation7 + $0x308] ss:$16 sps:$4 sm:$0xff]   ;;  %v4405_v27 = vld [vmem:[#allocation7 + $0x324] ss:$16 sps:$4 sm:$0xff]  }
 0x188   :  { %2855 = vmatpush1.bf16.msra.mxu0 %v4343_v28  ;;  %2937 = vmatpush1.bf16.msra.mxu1 %v4346_v29  ;;  %v4408_v28 = vld [vmem:[#allocation7 + $0x32c] ss:$16 sps:$4 sm:$0xff]   ;;  %v4403_v29 = vld [vmem:[#allocation7 + $0x320] ss:$16 sps:$4 sm:$0xff]  }
 0x189   :  { %2865 = vmatprep.subr.bf16.mxu0 %v4351_v30  ;;  %2947 = vmatprep.subr.bf16.mxu1 %v4354_v31  ;;  %v4406_v30 = vld [vmem:[#allocation7 + $0x328] ss:$16 sps:$4 sm:$0xff]   ;;  %v4411_v31 = vld [vmem:[#allocation7 + $0x344] ss:$16 sps:$4 sm:$0xff]  }
 0x21e   :  { %v1855_v21 = vpop.f32.mrb[0].mxu0  ;;  %v4745_v37 = vpop.f32.mrb[0].mxu1 }
 0x21f   :  { %v3818_v38 = vadd.f32 %v1855_v21, %v343_v35  ;;  %v1857_v39 = vpop.f32.mrb[1].mxu0  ;;  %v2021_v40 = vpop.f32.mrb[1].mxu1  ;;  %v4414_v35 = vld [vmem:[#allocation7 + $0x34c] ss:$16 sps:$4 sm:$0xff]   ;;  %v4417_v21 = vld [vmem:[#allocation7 + $0x364] ss:$16 sps:$4 sm:$0xff]  }
 0x220   :  { %v3819_v41 = vadd.f32 %v1857_v39, %v347_v36  ;;  %v3821_v43 = vadd.f32 %v2021_v40, %v355_v20  ;;  %v1859_v44 = vpop.f32.mrb[2].mxu0  ;;  %v2023_v45 = vpop.f32.mrb[2].mxu1  ;;  %v4409_v36 = vld [vmem:[#allocation7 + $0x340] ss:$16 sps:$4 sm:$0xff]   ;;  %v4412_v20 = vld [vmem:[#allocation7 + $0x348] ss:$16 sps:$4 sm:$0xff]  }
 0x221   :  { %v2026_v46 = vmax.f32 %v3818_v38, 0.0  ;;  %v1860_v47 = vpop.f32.mrb[3].mxu0  ;;  %v2024_v48 = vpop.f32.mrb[3].mxu1  ;;  %v4420_v38 = vld [vmem:[#allocation7 + $0x36c] ss:$16 sps:$4 sm:$0xff]  }
 0x222   :  { %v2027_v49 = vmax.f32 %v3819_v41, 0.0  ;;  %v2029_v50 = vmax.f32 %v3821_v43, 0.0  ;;  %v4415_v39 = vld [vmem:[#allocation7 + $0x360] ss:$16 sps:$4 sm:$0xff]   ;;  %v4418_v40 = vld [vmem:[#allocation7 + $0x368] ss:$16 sps:$4 sm:$0xff]  }
 0x223   :  { %v2030_v54 = vpack.c.bf16 %v2026_v46, %v2026_v46  ;;  %v4423_v41 = vld [vmem:[#allocation7 + $0x384] ss:$16 sps:$4 sm:$0xff]   ;;  %v4426_v43 = vld [vmem:[#allocation7 + $0x38c] ss:$16 sps:$4 sm:$0xff]   ;;  %v4421_v44 = vld [vmem:[#allocation7 + $0x380] ss:$16 sps:$4 sm:$0xff]  }
 0x224   :  { %v2031_v51 = vpack.c.bf16 %v2027_v49, %v2027_v49  ;;  %v2033_v57 = vpack.c.bf16 %v2029_v50, %v2029_v50  ;;  %v4424_v45 = vld [vmem:[#allocation7 + $0x388] ss:$16 sps:$4 sm:$0xff]   ;;  %v350_v46 = vsub.s32 2, %v4699_v42  ;;  %v4429_v47 = vld [vmem:[#allocation7 + $0x3a4] ss:$16 sps:$4 sm:$0xff]  }
 0x225   :  { %v4432_v48 = vld [vmem:[#allocation7 + $0x3ac] ss:$16 sps:$4 sm:$0xff]   ;;  %v4427_v49 = vld [vmem:[#allocation7 + $0x3a0] ss:$16 sps:$4 sm:$0xff]   ;;  %v4430_v50 = vld [vmem:[#allocation7 + $0x3a8] ss:$16 sps:$4 sm:$0xff]  }
 0x226   :  { %2856 = vmatprep.mubr.bf16.mxu0 %v2031_v51  ;;  %2938 = vmatprep.mubr.bf16.mxu1 %v2031_v51  ;;  %v351_v51 = vrot.slane %v4732_v32, %v350_v46  ;;  %v4445_v32 = vld [vmem:[#allocation8 + $0x40] sm:$0xff]  }
 0x227   :  { %2857 = vmatmul.mubr.bf16.vlgmr.msra.gmra.mrb[4].mxu0 %v2030_v54  ;;  %2939 = vmatmul.mubr.bf16.vlgmr.msra.gmra.mrb[4].mxu1 %v2030_v54  ;;  %v4433_v54 = vld [vmem:[#allocation7 + $0x3c0] ss:$16 sps:$4 sm:$0xff]  }
 0x228   :  { %2866 = vmatpush1.bf16.msra.mxu0 %v4349_v52  ;;  %2948 = vmatpush1.bf16.msra.mxu1 %v4352_v53  ;;  %v4435_v52 = vld [vmem:[#allocation7 + $0x3c4] ss:$16 sps:$4 sm:$0xff]   ;;  %v4438_v53 = vld [vmem:[#allocation7 + $0x3cc] ss:$16 sps:$4 sm:$0xff]  }
 0x229   :  { %2897 = vmatprep.mubr.bf16.mxu0 %v2033_v57  ;;  %2979 = vmatprep.mubr.bf16.mxu1 %v2033_v57  ;;  %v4441_v57 = vld [vmem:[#allocation7 + $0x3e4] ss:$16 sps:$4 sm:$0xff]  }
 0x22a   :  { %2867 = vmatprep.subr.bf16.mxu0 %v4357_v55  ;;  %2949 = vmatprep.subr.bf16.mxu1 %v4360_v56  ;;  %v4436_v55 = vld [vmem:[#allocation7 + $0x3c8] ss:$16 sps:$4 sm:$0xff]   ;;  %v3820_v56 = vadd.f32 %v4745_v37, %v351_v51 }
 0x22b   :  { %v4449_v37 = vld [vmem:[#allocation8 + $0x48] sm:$0xff]  }
 0x22c   :  { %2868 = vmatpush1.bf16.msra.mxu0 %v4355_v58  ;;  %2950 = vmatpush1.bf16.msra.mxu1 %v4358_v59  ;;  %v4444_v58 = vld [vmem:[#allocation7 + $0x3ec] ss:$16 sps:$4 sm:$0xff]   ;;  %v4439_v59 = vld [vmem:[#allocation7 + $0x3e0] ss:$16 sps:$4 sm:$0xff]  }
 0x22d   :  { %2869 = vmatprep.subr.bf16.mxu0 %v4363_v60  ;;  %2951 = vmatprep.subr.bf16.mxu1 %v4366_v61  ;;  %v4442_v60 = vld [vmem:[#allocation7 + $0x3e8] ss:$16 sps:$4 sm:$0xff]   ;;  %v2028_v61 = vmax.f32 %v3820_v56, 0.0 }
 0x230   :  { %2870 = vmatpush1.bf16.msra.mxu0 %v4361_v62  ;;  %2952 = vmatpush1.bf16.msra.mxu1 %v4364_v63  ;;  %v4446_v62 = vld [vmem:[#allocation8 + $0xc0] sm:$0xff]  }
 0x231   :  { %2871 = vmatprep.subr.bf16.mxu0 %v4369_v0  ;;  %2953 = vmatprep.subr.bf16.mxu1 %v4372_v1  ;;  %v4447_v63 = vld [vmem:[#allocation8] sm:$0xff]   ;;  %v2032_v1 = vpack.c.bf16 %v2028_v61, %v2028_v61 }
 0x232   :  { %v4448_v0 = vld [vmem:[#allocation8 + $0x80] sm:$0xff]  }
 0x234   :  { %2872 = vmatpush1.bf16.msra.mxu0 %v4367_v2  ;;  %2954 = vmatpush1.bf16.msra.mxu1 %v4370_v3  ;;  %v4450_v2 = vld [vmem:[#allocation8 + $0xc8] sm:$0xff]  }
 0x235   :  { %2873 = vmatprep.subr.bf16.mxu0 %v4375_v4  ;;  %2955 = vmatprep.subr.bf16.mxu1 %v4378_v5  ;;  %v4451_v3 = vld [vmem:[#allocation8 + $0x8] sm:$0xff]   ;;  %v4453_v5 = vld [vmem:[#allocation8 + $0x50] sm:$0xff]  }
 0x236   :  { %v4452_v4 = vld [vmem:[#allocation8 + $0x88] sm:$0xff]  }
 0x238   :  { %2874 = vmatpush1.bf16.msra.mxu0 %v4373_v6  ;;  %2956 = vmatpush1.bf16.msra.mxu1 %v4376_v7  ;;  %v4454_v6 = vld [vmem:[#allocation8 + $0xd0] sm:$0xff]  }
 0x239   :  { %2875 = vmatprep.subr.bf16.mxu0 %v4381_v8  ;;  %2957 = vmatprep.subr.bf16.mxu1 %v4384_v9  ;;  %v4455_v7 = vld [vmem:[#allocation8 + $0x10] sm:$0xff]   ;;  %v4457_v9 = vld [vmem:[#allocation8 + $0x58] sm:$0xff]  }
 0x23a   :  { %v4456_v8 = vld [vmem:[#allocation8 + $0x90] sm:$0xff]  }
 0x23c   :  { %2876 = vmatpush1.bf16.msra.mxu0 %v4379_v10  ;;  %2958 = vmatpush1.bf16.msra.mxu1 %v4382_v11  ;;  %v4458_v10 = vld [vmem:[#allocation8 + $0xd8] sm:$0xff]  }
 0x23d   :  { %2877 = vmatprep.subr.bf16.mxu0 %v4387_v12  ;;  %2959 = vmatprep.subr.bf16.mxu1 %v4390_v13  ;;  %v4459_v11 = vld [vmem:[#allocation8 + $0x18] sm:$0xff]   ;;  %v4461_v13 = vld [vmem:[#allocation8 + $0x60] sm:$0xff]  }
 0x23e   :  { %v4460_v12 = vld [vmem:[#allocation8 + $0x98] sm:$0xff]  }
 0x240   :  { %2878 = vmatpush1.bf16.msra.mxu0 %v4385_v14  ;;  %2960 = vmatpush1.bf16.msra.mxu1 %v4388_v16  ;;  %v4462_v14 = vld [vmem:[#allocation8 + $0xe0] sm:$0xff]  }
 0x241   :  { %2879 = vmatprep.subr.bf16.mxu0 %v4393_v17  ;;  %2961 = vmatprep.subr.bf16.mxu1 %v4396_v18  ;;  %v4463_v16 = vld [vmem:[#allocation8 + $0x20] sm:$0xff]   ;;  %v4465_v18 = vld [vmem:[#allocation8 + $0x68] sm:$0xff]  }
 0x242   :  { %v4464_v17 = vld [vmem:[#allocation8 + $0xa0] sm:$0xff]  }
 0x244   :  { %2880 = vmatpush1.bf16.msra.mxu0 %v4391_v19  ;;  %2962 = vmatpush1.bf16.msra.mxu1 %v4394_v22  ;;  %v4466_v19 = vld [vmem:[#allocation8 + $0xe8] sm:$0xff]  }
 0x245   :  { %2881 = vmatprep.subr.bf16.mxu0 %v4399_v23  ;;  %2963 = vmatprep.subr.bf16.mxu1 %v4402_v24  ;;  %v4467_v22 = vld [vmem:[#allocation8 + $0x28] sm:$0xff]   ;;  %v4469_v24 = vld [vmem:[#allocation8 + $0x70] sm:$0xff]  }
 0x246   :  { %v4468_v23 = vld [vmem:[#allocation8 + $0xa8] sm:$0xff]  }
 0x248   :  { %2882 = vmatpush1.bf16.msra.mxu0 %v4397_v25  ;;  %2964 = vmatpush1.bf16.msra.mxu1 %v4400_v26  ;;  %v4470_v25 = vld [vmem:[#allocation8 + $0xf0] sm:$0xff]  }
 0x249   :  { %2883 = vmatprep.subr.bf16.mxu0 %v4405_v27  ;;  %2965 = vmatprep.subr.bf16.mxu1 %v4408_v28  ;;  %v4471_v26 = vld [vmem:[#allocation8 + $0x30] sm:$0xff]   ;;  %v4473_v28 = vld [vmem:[#allocation8 + $0x78] sm:$0xff]  }
 0x24a   :  { %v4472_v27 = vld [vmem:[#allocation8 + $0xb0] sm:$0xff]  }
 0x24c   :  { %2884 = vmatpush1.bf16.msra.mxu0 %v4403_v29  ;;  %2966 = vmatpush1.bf16.msra.mxu1 %v4406_v30  ;;  %v4474_v29 = vld [vmem:[#allocation8 + $0xf8] sm:$0xff]  }
 0x24d   :  { %2885 = vmatprep.subr.bf16.mxu0 %v4411_v31  ;;  %2967 = vmatprep.subr.bf16.mxu1 %v4414_v35  ;;  %v4475_v30 = vld [vmem:[#allocation8 + $0x38] sm:$0xff]  }
 0x24e   :  { %v4476_v31 = vld [vmem:[#allocation8 + $0xb8] sm:$0xff]  }
 0x24f   :  { %v2162_v35 = vld [vmem:[%s4782_s4] sm:$0xf] }
 0x250   :  { %2886 = vmatpush1.bf16.msra.mxu0 %v4409_v36  ;;  %2968 = vmatpush1.bf16.msra.mxu1 %v4412_v20  ;;  %v2167_v36 = vrot.slane %v2162_v35, %v342_v15  ;;  %v2175_v20 = vrot.slane %v2162_v35, %v350_v46 }
 0x251   :  { %2887 = vmatprep.subr.bf16.mxu0 %v4417_v21  ;;  %2969 = vmatprep.subr.bf16.mxu1 %v4420_v38  ;;  %v2171_v21 = vrot.slane %v2162_v35, %v346_v33  ;;  %v2179_v38 = vrot.slane %v2162_v35, %v354_v34 }
 0x254   :  { %2888 = vmatpush1.bf16.msra.mxu0 %v4415_v39  ;;  %2970 = vmatpush1.bf16.msra.mxu1 %v4418_v40 }
 0x255   :  { %2889 = vmatprep.subr.bf16.mxu0 %v4423_v41  ;;  %2971 = vmatprep.subr.bf16.mxu1 %v4426_v43 }
 0x258   :  { %2890 = vmatpush1.bf16.msra.mxu0 %v4421_v44  ;;  %2972 = vmatpush1.bf16.msra.mxu1 %v4424_v45 }
 0x259   :  { %2891 = vmatprep.subr.bf16.mxu0 %v4429_v47  ;;  %2973 = vmatprep.subr.bf16.mxu1 %v4432_v48 }
 0x25c   :  { %2892 = vmatpush1.bf16.msra.mxu0 %v4427_v49  ;;  %2974 = vmatpush1.bf16.msra.mxu1 %v4430_v50 }
 0x25d   :  { %2893 = vmatprep.subr.bf16.mxu0 %v4435_v52  ;;  %2975 = vmatprep.subr.bf16.mxu1 %v4438_v53 }
 0x260   :  { %2894 = vmatpush1.bf16.msra.mxu0 %v4433_v54  ;;  %2976 = vmatpush1.bf16.msra.mxu1 %v4436_v55 }
 0x261   :  { %2895 = vmatprep.subr.bf16.mxu0 %v4441_v57  ;;  %2977 = vmatprep.subr.bf16.mxu1 %v4444_v58  ;;  %v3741_v58 = vld [vmem:[%s4784_s6] ss:$0 sm:$0xff] }
 0x264   :  { %2896 = vmatpush1.bf16.msra.mxu0 %v4439_v59  ;;  %2978 = vmatpush1.bf16.msra.mxu1 %v4442_v60 }
 0x265   :  { %3774 = vmatprep.subr.bf16.mxu0 %v4445_v32  ;;  %3796 = vmatprep.subr.bf16.mxu1 %v4446_v62 }
 0x267   :  { %2898 = vmatmul.mubr.bf16.vlgmr.msra.gmra.mrb[4].mxu0 %v2032_v1  ;;  %2980 = vmatmul.mubr.bf16.vlgmr.msra.gmra.mrb[4].mxu1 %v2032_v1 }
 0x268   :  { %3775 = vmatpush3.bf16.msra.mxu0 %v4447_v63  ;;  %3797 = vmatpush3.bf16.msra.mxu1 %v4448_v0 }
 0x269   :  { %3776 = vmatprep.subr.bf16.mxu0 %v4449_v37  ;;  %3798 = vmatprep.subr.bf16.mxu1 %v4450_v2 }
 0x26c   :  { %3777 = vmatpush3.bf16.msra.mxu0 %v4451_v3  ;;  %3799 = vmatpush3.bf16.msra.mxu1 %v4452_v4 }
 0x26d   :  { %3778 = vmatprep.subr.bf16.mxu0 %v4453_v5  ;;  %3800 = vmatprep.subr.bf16.mxu1 %v4454_v6 }
 0x270   :  { %3779 = vmatpush3.bf16.msra.mxu0 %v4455_v7  ;;  %3801 = vmatpush3.bf16.msra.mxu1 %v4456_v8 }
 0x271   :  { %3780 = vmatprep.subr.bf16.mxu0 %v4457_v9  ;;  %3802 = vmatprep.subr.bf16.mxu1 %v4458_v10 }
 0x274   :  { %3781 = vmatpush3.bf16.msra.mxu0 %v4459_v11  ;;  %3803 = vmatpush3.bf16.msra.mxu1 %v4460_v12 }
 0x275   :  { %3782 = vmatprep.subr.bf16.mxu0 %v4461_v13  ;;  %3804 = vmatprep.subr.bf16.mxu1 %v4462_v14 }
 0x278   :  { %3783 = vmatpush3.bf16.msra.mxu0 %v4463_v16  ;;  %3805 = vmatpush3.bf16.msra.mxu1 %v4464_v17 }
 0x279   :  { %3784 = vmatprep.subr.bf16.mxu0 %v4465_v18  ;;  %3806 = vmatprep.subr.bf16.mxu1 %v4466_v19 }
 0x27c   :  { %3785 = vmatpush3.bf16.msra.mxu0 %v4467_v22  ;;  %3807 = vmatpush3.bf16.msra.mxu1 %v4468_v23 }
 0x27d   :  { %3786 = vmatprep.subr.bf16.mxu0 %v4469_v24  ;;  %3808 = vmatprep.subr.bf16.mxu1 %v4470_v25 }
 0x280   :  { %3787 = vmatpush3.bf16.msra.mxu0 %v4471_v26  ;;  %3809 = vmatpush3.bf16.msra.mxu1 %v4472_v27 }
 0x281   :  { %3788 = vmatprep.subr.bf16.mxu0 %v4473_v28  ;;  %3810 = vmatprep.subr.bf16.mxu1 %v4474_v29 }
 0x284   :  { %3789 = vmatpush3.bf16.msra.mxu0 %v4475_v30  ;;  %3811 = vmatpush3.bf16.msra.mxu1 %v4476_v31 }
 0x33a   :  { %v2899_v39 = vpop.f32.mrb[4].mxu0  ;;  %v2981_v40 = vpop.f32.mrb[4].mxu1 }
 0x33b   :  { %v3822_v41 = vadd.f32 %v2899_v39, %v2167_v36  ;;  %v3824_v43 = vadd.f32 %v2981_v40, %v2175_v20  ;;  %v2901_v44 = vpop.f32.mrb[5].mxu0  ;;  %v2983_v45 = vpop.f32.mrb[5].mxu1 }
 0x33c   :  { %v3823_v47 = vadd.f32 %v2901_v44, %v2171_v21  ;;  %v3825_v48 = vadd.f32 %v2983_v45, %v2179_v38  ;;  %v2903_v49 = vpop.f32.mrb[6].mxu0  ;;  %v2985_v50 = vpop.f32.mrb[6].mxu1 }
 0x33d   :  { %v2988_v15 = vmax.f32 %v3822_v41, 0.0  ;;  %v2990_v51 = vmax.f32 %v3824_v43, 0.0  ;;  %v2904_v52 = vpop.f32.mrb[7].mxu0  ;;  %v2986_v46 = vpop.f32.mrb[7].mxu1 }
 0x33e   :  { %v2989_v53 = vmax.f32 %v3823_v47, 0.0  ;;  %v2991_v54 = vmax.f32 %v3825_v48, 0.0 }
 0x33f   :  { %v2992_v42 = vpack.c.bf16 %v2988_v15, %v2988_v15  ;;  %v2994_v34 = vpack.c.bf16 %v2990_v51, %v2990_v51 }
 0x340   :  { %v2993_v33 = vpack.c.bf16 %v2989_v53, %v2989_v53  ;;  %v2995_v55 = vpack.c.bf16 %v2991_v54, %v2991_v54 }
 0x342   :  { %3291 = vmatprep.mubr.bf16.mxu0 %v2993_v33  ;;  %3331 = vmatprep.mubr.bf16.mxu1 %v2995_v55 }
 0x343   :  { %3292 = vmatmul.mubr.bf16.vlgmr.msra.gmra.mrb[8].mxu0 %v2992_v42  ;;  %3332 = vmatmul.mubr.bf16.vlgmr.msra.gmra.mrb[8].mxu1 %v2994_v34 }
 0x416   :  { %v3790_v56 = vpop.f32.mrb[8].mxu0  ;;  %v3812_v57 = vpop.f32.mrb[8].mxu1 }
 0x417   :  { %v3791_v59 = vpop.f32.mrb[9].mxu0  ;;  %v3813_v60 = vpop.f32.mrb[9].mxu1 }
 0x418   :  { %v3792_v61 = vadd.f32 %v3791_v59, %v3790_v56  ;;  %v3814_v32 = vadd.f32 %v3813_v60, %v3812_v57  ;;  %v3793_v62 = vpop.f32.mrb[10].mxu0  ;;  %v3815_v63 = vpop.f32.mrb[10].mxu1 }
 0x419   :  { %v3794_v0 = vpop.f32.mrb[11].mxu0  ;;  %v3816_v1 = vpop.f32.mrb[11].mxu1 }
 0x41a   :  { %v3294_v37 = vadd.f32 %v3792_v61, %v3741_v58 }
 0x41c   :  { %v3334_v2 = vadd.f32 %v3814_v32, %v3294_v37 }
 0x41e   :  { %3339 = vst [vmem:[#allocation10] sm:$0x3] %v3334_v2 }
 0x41f   :  { %4576 = shalt.err (!%p4573_p8)
}
 0x420   :  { %s4577_s10 = scalar_lea.hbm %s4785_s7, 32 }
 0x421   :  { %p4578_p9 = scmp.ne.s32.totalorder %s4785_s7, %s4577_s10  ;;  %p4581_p10 = scmp.lt.u32.totalorder %s4577_s10, %s4785_s7 }
 0x423   :  { %p4583_p11 = pnand %p4581_p10, %p4578_p9 }
 0x425   :  { %4586 = shalt.err (!%p4583_p11)
}
 0x426   :  { %3349 = dma.vmem_to_hbm [thread:$0]  %s3347_s30, 32, %s4785_s7, [#allocation4]  }
 0x427   :  { %4593 = dma.done.wait [#allocation4], 32  }
 0x428   :  { %4594 = vsyncadd [#allocation4], 4294967264 }
 0x429   :  { %3353 = vsyncpa [#allocation3], 1 }
 0x42a   :  { %3354 = vsyncpa [#allocation6], 1 }
 0x42b   :  { %3355 = vsyncpa [#allocation9], 1 }
 0x42c   :  { %3356 = vsyncpa [#allocation4], 1 }

</bundles_post_ra>
